<compile_context>
chip_gen: v7x
topology: tpu7x:2x2x1
jax: 0.10.0
libtpu: 0.0.40
codegen_flags: <defaults>
</compile_context>

<pallas_src>
import functools

import numpy as np
import jax
import jax.numpy as jnp
from jax import lax
from jax.experimental import pallas as pl
from jax.experimental.pallas import tpu as pltpu


def _round_up(v, m):
    return ((v + m - 1) // m) * m


# ---------------------------------------------------------------------------
# Pass 1: in-kernel im2col conv (k^3 tap dots on the MXU) + bias,
#         plus per-tile BN partials (mean, centered M2).
# ---------------------------------------------------------------------------
def _conv_stats_kernel(*refs, k, wp, p_blk, inv_n_valid):
    planes = refs[:k]                        # k refs, each (C_in_p, Lp) bf16
    w_ref, b_ref, mask_ref = refs[k:k + 3]
    y_ref, stats_ref = refs[k + 3:]

    c_out = w_ref.shape[1]
    acc = jnp.zeros((c_out, p_blk), jnp.float32)
    for kd in range(k):
        for kh in range(k):
            for kw in range(k):
                off = kh * wp + kw                          # static lane offset
                a = planes[kd][:, off:off + p_blk]          # (C_in_p, P) bf16
                w_tap = w_ref[kd * k * k + kh * k + kw]     # (C_out, C_in_p) bf16
                acc = acc + jnp.dot(w_tap, a,
                                    preferred_element_type=jnp.float32)

    y = acc + b_ref[...]                     # (C_out, P) f32
    y_ref[...] = y.astype(y_ref.dtype)       # bf16 conv buffer

    # BN partials from the pre-cast f32 values; W-pad columns masked out.
    mask = mask_ref[...]                     # (1, P) f32 in {0, 1}
    mean_t = jnp.sum(y * mask, axis=1, keepdims=True) * inv_n_valid
    diff = (y - mean_t) * mask
    m2_t = jnp.sum(diff * diff, axis=1, keepdims=True)
    stats_ref[...] = jnp.concatenate([mean_t, m2_t], axis=1)   # (C_out, 2)


# ---------------------------------------------------------------------------
# Pass 2: fused BN affine (per-channel scale/shift) + ReLU.
# ---------------------------------------------------------------------------
def _bn_relu_kernel(y_ref, scale_ref, shift_ref, o_ref):
    y = y_ref[...].astype(jnp.float32)
    o_ref[...] = jnp.maximum(y * scale_ref[...] + shift_ref[...],
                             0.0).astype(o_ref.dtype)


# ---------------------------------------------------------------------------
# Wrapper
# ---------------------------------------------------------------------------
@functools.partial(jax.jit, static_argnames=("kernel_size", "eps"))
def conv3d_block(x, weight, bias, gamma, beta, *, kernel_size=3, eps=1e-5):
    """Conv3DBlock forward.

    x:      (N, C_in, D, H, W)      float32, NCDHW
    weight: (C_out, C_in, k, k, k)  Conv3d weight
    bias:   (C_out,)                Conv3d bias
    gamma:  (C_out,)                BatchNorm3d weight
    beta:   (C_out,)                BatchNorm3d bias
    returns (N, C_out, D, H, W)
    """
    n, c_in, d, h, w = x.shape
    c_out = weight.shape[0]
    k = kernel_size
    assert k % 2 == 1, "only odd kernel_size ('same' padding) supported"
    pad = (k - 1) // 2

    dp, hp, wp = d + 2 * pad, h + 2 * pad, w + 2 * pad
    c_in_p = _round_up(c_in, 8)                     # sublane-friendly channel pad
    p_blk = _round_up(h * wp, 128)                  # lane-dense output cols per (n,d)
    lp = _round_up(p_blk + (k - 1) * wp + (k - 1), 128)  # plane len incl. halo margin
    n_valid = h * w
    t = n * d

    # --- wrapper glue (cheap, ~1x input): zero-pad, channels-last planes, bf16 ---
    xp = jnp.pad(x, ((0, 0), (0, 0), (pad, pad), (pad, pad), (pad, pad)))
    xp = xp.transpose(0, 2, 1, 3, 4).reshape(n, dp, c_in, hp * wp)
    xp = jnp.pad(xp, ((0, 0), (0, 0), (0, c_in_p - c_in), (0, lp - hp * wp)))
    xp = xp.astype(jnp.bfloat16)

    w_taps = weight.transpose(2, 3, 4, 0, 1).reshape(k ** 3, c_out, c_in)
    w_taps = jnp.pad(w_taps, ((0, 0), (0, 0), (0, c_in_p - c_in)))
    w_taps = w_taps.astype(jnp.bfloat16)
    b2d = bias.reshape(c_out, 1).astype(jnp.float32)

    cols = np.arange(p_blk)
    valid = ((cols // wp) < h) & ((cols % wp) < w)
    mask = jnp.asarray(valid.reshape(1, p_blk), dtype=jnp.float32)

    # k overlapping d-plane loads of the same array (kd = 0..k-1).
    in_specs = [
        pl.BlockSpec((None, None, c_in_p, lp),
                     lambda b, j, kd=kd: (b, j + kd, 0, 0))
        for kd in range(k)
    ]
    in_specs += [
        pl.BlockSpec((k ** 3, c_out, c_in_p), lambda b, j: (0, 0, 0)),
        pl.BlockSpec((c_out, 1), lambda b, j: (0, 0)),
        pl.BlockSpec((1, p_blk), lambda b, j: (0, 0)),
    ]

    # VMEM per grid step (double-buffered bf16 planes + bf16 y block + consts),
    # capped well under the v7x 64 MiB / 32 MiB-scoped budget.
    step_bytes = (2 * k * c_in_p * lp * 2 + 2 * c_out * p_blk * 2
                  + c_out * p_blk * 4 + k ** 3 * c_out * c_in_p * 2
                  + p_blk * 4 + c_out * 16)
    vmem_bytes = int(min(32 * 2 ** 20, max(4 * 2 ** 20, 8 * step_bytes)))

    kern1 = functools.partial(_conv_stats_kernel, k=k, wp=wp, p_blk=p_blk,
                              inv_n_valid=1.0 / n_valid)

    y_conv, stats = pl.pallas_call(
        kern1,
        out_shape=(
            jax.ShapeDtypeStruct((n, d, c_out, p_blk), jnp.bfloat16),
            jax.ShapeDtypeStruct((n, d, c_out, 2), jnp.float32),
        ),
        grid=(n, d),
        in_specs=in_specs,
        out_specs=(
            pl.BlockSpec((None, None, c_out, p_blk), lambda b, j: (b, j, 0, 0)),
            pl.BlockSpec((None, None, c_out, 2), lambda b, j: (b, j, 0, 0)),
        ),
        compiler_params=pltpu.CompilerParams(
            dimension_semantics=("parallel", "parallel"),
            vmem_limit_bytes=vmem_bytes),
        cost_estimate=pl.CostEstimate(
            flops=int(2 * c_out * c_in_p * k ** 3 * t * p_blk),
            transcendentals=0,
            bytes_accessed=int(k * t * c_in_p * lp * 2
                               + t * c_out * p_blk * 2 + t * c_out * 8)),
    )(*([xp] * k), w_taps, b2d, mask)

    # --- tiny per-channel combine (Chan, centered partials) + BN fold -----------
    mean_t = stats[..., 0].reshape(t, c_out)
    m2_t = stats[..., 1].reshape(t, c_out)
    mean = jnp.mean(mean_t, axis=0)                          # equal-size tiles
    m2 = jnp.sum(m2_t, axis=0) + n_valid * jnp.sum((mean_t - mean) ** 2, axis=0)
    var = m2 / (t * n_valid)                 # biased var (BN training-mode norm)
    inv_std = lax.rsqrt(var + eps)
    g = gamma.astype(jnp.float32)
    scale = (g * inv_std).reshape(c_out, 1)
    shift = (beta.astype(jnp.float32) - mean * g * inv_std).reshape(c_out, 1)

    # --- pass 2: elementwise BN affine + ReLU over the bf16 conv buffer ---------
    y2 = y_conv.reshape(t, c_out, p_blk)
    rows_cap = max(1, (4 * 2 ** 20) // (c_out * p_blk * 16))
    rows_cap = min(rows_cap, max(1, t // 2))                 # >=2 steps for megacore
    r = 1
    for cand in range(min(t, rows_cap), 0, -1):
        if t % cand == 0:
            r = cand
            break

    out_pad = pl.pallas_call(
        _bn_relu_kernel,
        out_shape=jax.ShapeDtypeStruct((t, c_out, p_blk), jnp.float32),
        grid=(t // r,),
        in_specs=[
            pl.BlockSpec((r, c_out, p_blk), lambda i: (i, 0, 0)),
            pl.BlockSpec((c_out, 1), lambda i: (0, 0)),
            pl.BlockSpec((c_out, 1), lambda i: (0, 0)),
        ],
        out_specs=pl.BlockSpec((r, c_out, p_blk), lambda i: (i, 0, 0)),
        compiler_params=pltpu.CompilerParams(
            dimension_semantics=("parallel",),
            vmem_limit_bytes=vmem_bytes),
        cost_estimate=pl.CostEstimate(
            flops=int(2 * t * c_out * p_blk), transcendentals=0,
            bytes_accessed=int(6 * t * c_out * p_blk)),
    )(y2, scale, shift)

    # --- extract valid columns -> NCDHW -----------------------------------------
    # TODO(synk): write NCDHW directly from pass 2 (in-kernel (C_out, H*Wp) ->
    # (C_out, H, W) relayout) to remove this strided-slice/transpose copy.
    out = out_pad.reshape(n, d, c_out, p_blk)[:, :, :, :h * wp]
    out = out.reshape(n, d, c_out, h, wp)[..., :w]
    return out.transpose(0, 2, 1, 3, 4)


# ---------------------------------------------------------------------------
# Pure-JAX reference (lax conv + training-mode BN + ReLU)
# ---------------------------------------------------------------------------
def _reference(x, weight, bias, gamma, beta, eps=1e-5):
    y = lax.conv_general_dilated(
        x, weight, window_strides=(1, 1, 1), padding="SAME",
        dimension_numbers=("NCDHW", "OIDHW", "NCDHW"))
    y = y + bias.reshape(1, -1, 1, 1, 1)
    mean = jnp.mean(y, axis=(0, 2, 3, 4), keepdims=True)
    var = jnp.mean((y - mean) ** 2, axis=(0, 2, 3, 4), keepdims=True)
    y = (y - mean) * lax.rsqrt(var + eps)
    y = y * gamma.reshape(1, -1, 1, 1, 1) + beta.reshape(1, -1, 1, 1, 1)
    return jnp.maximum(y, 0.0)


if __name__ == "__main__":
    # Small, module-consistent shapes: batch=2, in_planes=4, out_planes=8,
    # spatial 16x16x16, kernel_size=3.
    N, C_IN, C_OUT, D, H, W, K = 2, 4, 8, 16, 16, 16, 3

    key = jax.random.PRNGKey(0)
    kx, kwt, kb = jax.random.split(key, 3)

    x = jax.random.normal(kx, (N, C_IN, D, H, W), dtype=jnp.float32)

    # Deterministic parameter init (shapes match nn.Conv3d / nn.BatchNorm3d).
    fan_in = C_IN * K ** 3
    bound = 1.0 / (fan_in ** 0.5)
    weight = jax.random.uniform(kwt, (C_OUT, C_IN, K, K, K),
                                minval=-bound, maxval=bound, dtype=jnp.float32)
    bias = jax.random.uniform(kb, (C_OUT,), minval=-bound, maxval=bound,
                              dtype=jnp.float32)
    gamma = jnp.ones((C_OUT,), jnp.float32)   # BatchNorm3d default weight
    beta = jnp.zeros((C_OUT,), jnp.float32)   # BatchNorm3d default bias

    out = conv3d_block(x, weight, bias, gamma, beta, kernel_size=K)
    out = jax.block_until_ready(out)

    ref = jax.block_until_ready(_reference(x, weight, bias, gamma, beta))
    assert out.shape == (N, C_OUT, D, H, W)
    err = float(jnp.max(jnp.abs(out - ref)))
    # bf16 activation/weight stream on the MXU -> ~1e-2 tolerance.
    assert jnp.allclose(out, ref, atol=3e-2, rtol=3e-2), (
        f"mismatch vs reference (max abs err {err:.4g})")

    print("KERNEL_OK")
</pallas_src>

<mosaic_0001>
module attributes {stable_mosaic.version = 11 : i64} {
  func.func @_conv_stats_kernel(%arg0: i32, %arg1: i32, %arg2: memref<1x1x8x512xbf16, #tpu.memory_space<vmem>>, %arg3: memref<1x1x8x512xbf16, #tpu.memory_space<vmem>>, %arg4: memref<1x1x8x512xbf16, #tpu.memory_space<vmem>>, %arg5: memref<27x8x8xbf16, #tpu.memory_space<vmem>>, %arg6: memref<8x1xf32, #tpu.memory_space<vmem>>, %arg7: memref<1x384xf32, #tpu.memory_space<vmem>>, %arg8: memref<1x1x8x384xbf16, #tpu.memory_space<vmem>>, %arg9: memref<1x1x8x2xf32, #tpu.memory_space<vmem>>) attributes {dimension_semantics = [#tpu.dimension_semantics<parallel>, #tpu.dimension_semantics<parallel>], iteration_bounds = array<i64: 2, 16>, scalar_prefetch = 0 : i64, scratch_operands = 0 : i64, tpu.core_type = #tpu.core_type<tc>, window_params = [{transform_indices = @transform_0, window_bounds = array<i64: 1, 1, 8, 512>}, {transform_indices = @transform_1, window_bounds = array<i64: 1, 1, 8, 512>}, {transform_indices = @transform_2, window_bounds = array<i64: 1, 1, 8, 512>}, {pipeline_mode = #tpu.pipeline_mode<synchronous>, transform_indices = @transform_3, window_bounds = array<i64: 27, 8, 8>}, {pipeline_mode = #tpu.pipeline_mode<synchronous>, transform_indices = @transform_4, window_bounds = array<i64: 8, 1>}, {pipeline_mode = #tpu.pipeline_mode<synchronous>, transform_indices = @transform_5, window_bounds = array<i64: 1, 384>}, {transform_indices = @transform_6, window_bounds = array<i64: 1, 1, 8, 384>}, {transform_indices = @transform_7, window_bounds = array<i64: 1, 1, 8, 2>}]} {
    %cst = arith.constant 0.000000e+00 : f32
    %0 = vector.broadcast %cst : f32 to vector<8x384xf32>
    %c0 = arith.constant 0 : index
    %c0_0 = arith.constant 0 : index
    %c0_1 = arith.constant 0 : index
    %c0_2 = arith.constant 0 : index
    %1 = vector.load %arg2[%c0, %c0_0, %c0_1, %c0_2] : memref<1x1x8x512xbf16, #tpu.memory_space<vmem>>, vector<1x1x8x384xbf16>
    %2 = vector.shape_cast %1 : vector<1x1x8x384xbf16> to vector<8x384xbf16>
    %c0_3 = arith.constant 0 : index
    %c0_4 = arith.constant 0 : index
    %c0_5 = arith.constant 0 : index
    %3 = vector.load %arg5[%c0_3, %c0_4, %c0_5] : memref<27x8x8xbf16, #tpu.memory_space<vmem>>, vector<1x8x8xbf16>
    %4 = vector.shape_cast %3 : vector<1x8x8xbf16> to vector<8x8xbf16>
    %cst_6 = arith.constant dense<0.000000e+00> : vector<8x384xf32>
    %5 = tpu.matmul %4, %2, %cst_6 {dimension_numbers = #tpu.dot_dimension_numbers<[1], [0], [0], [1], [0, 0, 1, 1], [], []>} : vector<8x8xbf16>, vector<8x384xbf16>, vector<8x384xf32> -> vector<8x384xf32>
    %6 = arith.addf %0, %5 : vector<8x384xf32>
    %c0_7 = arith.constant 0 : index
    %c0_8 = arith.constant 0 : index
    %c0_9 = arith.constant 0 : index
    %c1 = arith.constant 1 : index
    %7 = vector.load %arg2[%c0_7, %c0_8, %c0_9, %c1] : memref<1x1x8x512xbf16, #tpu.memory_space<vmem>>, vector<1x1x8x384xbf16>
    %8 = vector.shape_cast %7 : vector<1x1x8x384xbf16> to vector<8x384xbf16>
    %c1_10 = arith.constant 1 : index
    %c0_11 = arith.constant 0 : index
    %c0_12 = arith.constant 0 : index
    %9 = vector.load %arg5[%c1_10, %c0_11, %c0_12] : memref<27x8x8xbf16, #tpu.memory_space<vmem>>, vector<1x8x8xbf16>
    %10 = vector.shape_cast %9 : vector<1x8x8xbf16> to vector<8x8xbf16>
    %cst_13 = arith.constant dense<0.000000e+00> : vector<8x384xf32>
    %11 = tpu.matmul %10, %8, %cst_13 {dimension_numbers = #tpu.dot_dimension_numbers<[1], [0], [0], [1], [0, 0, 1, 1], [], []>} : vector<8x8xbf16>, vector<8x384xbf16>, vector<8x384xf32> -> vector<8x384xf32>
    %12 = arith.addf %6, %11 : vector<8x384xf32>
    %c0_14 = arith.constant 0 : index
    %c0_15 = arith.constant 0 : index
    %c0_16 = arith.constant 0 : index
    %c2 = arith.constant 2 : index
    %13 = vector.load %arg2[%c0_14, %c0_15, %c0_16, %c2] : memref<1x1x8x512xbf16, #tpu.memory_space<vmem>>, vector<1x1x8x384xbf16>
    %14 = vector.shape_cast %13 : vector<1x1x8x384xbf16> to vector<8x384xbf16>
    %c2_17 = arith.constant 2 : index
    %c0_18 = arith.constant 0 : index
    %c0_19 = arith.constant 0 : index
    %15 = vector.load %arg5[%c2_17, %c0_18, %c0_19] : memref<27x8x8xbf16, #tpu.memory_space<vmem>>, vector<1x8x8xbf16>
    %16 = vector.shape_cast %15 : vector<1x8x8xbf16> to vector<8x8xbf16>
    %cst_20 = arith.constant dense<0.000000e+00> : vector<8x384xf32>
    %17 = tpu.matmul %16, %14, %cst_20 {dimension_numbers = #tpu.dot_dimension_numbers<[1], [0], [0], [1], [0, 0, 1, 1], [], []>} : vector<8x8xbf16>, vector<8x384xbf16>, vector<8x384xf32> -> vector<8x384xf32>
    %18 = arith.addf %12, %17 : vector<8x384xf32>
    %c0_21 = arith.constant 0 : index
    %c0_22 = arith.constant 0 : index
    %c0_23 = arith.constant 0 : index
    %c18 = arith.constant 18 : index
    %19 = vector.load %arg2[%c0_21, %c0_22, %c0_23, %c18] : memref<1x1x8x512xbf16, #tpu.memory_space<vmem>>, vector<1x1x8x384xbf16>
    %20 = vector.shape_cast %19 : vector<1x1x8x384xbf16> to vector<8x384xbf16>
    %c3 = arith.constant 3 : index
    %c0_24 = arith.constant 0 : index
    %c0_25 = arith.constant 0 : index
    %21 = vector.load %arg5[%c3, %c0_24, %c0_25] : memref<27x8x8xbf16, #tpu.memory_space<vmem>>, vector<1x8x8xbf16>
    %22 = vector.shape_cast %21 : vector<1x8x8xbf16> to vector<8x8xbf16>
    %cst_26 = arith.constant dense<0.000000e+00> : vector<8x384xf32>
    %23 = tpu.matmul %22, %20, %cst_26 {dimension_numbers = #tpu.dot_dimension_numbers<[1], [0], [0], [1], [0, 0, 1, 1], [], []>} : vector<8x8xbf16>, vector<8x384xbf16>, vector<8x384xf32> -> vector<8x384xf32>
    %24 = arith.addf %18, %23 : vector<8x384xf32>
    %c0_27 = arith.constant 0 : index
    %c0_28 = arith.constant 0 : index
    %c0_29 = arith.constant 0 : index
    %c19 = arith.constant 19 : index
    %25 = vector.load %arg2[%c0_27, %c0_28, %c0_29, %c19] : memref<1x1x8x512xbf16, #tpu.memory_space<vmem>>, vector<1x1x8x384xbf16>
    %26 = vector.shape_cast %25 : vector<1x1x8x384xbf16> to vector<8x384xbf16>
    %c4 = arith.constant 4 : index
    %c0_30 = arith.constant 0 : index
    %c0_31 = arith.constant 0 : index
    %27 = vector.load %arg5[%c4, %c0_30, %c0_31] : memref<27x8x8xbf16, #tpu.memory_space<vmem>>, vector<1x8x8xbf16>
    %28 = vector.shape_cast %27 : vector<1x8x8xbf16> to vector<8x8xbf16>
    %cst_32 = arith.constant dense<0.000000e+00> : vector<8x384xf32>
    %29 = tpu.matmul %28, %26, %cst_32 {dimension_numbers = #tpu.dot_dimension_numbers<[1], [0], [0], [1], [0, 0, 1, 1], [], []>} : vector<8x8xbf16>, vector<8x384xbf16>, vector<8x384xf32> -> vector<8x384xf32>
    %30 = arith.addf %24, %29 : vector<8x384xf32>
    %c0_33 = arith.constant 0 : index
    %c0_34 = arith.constant 0 : index
    %c0_35 = arith.constant 0 : index
    %c20 = arith.constant 20 : index
    %31 = vector.load %arg2[%c0_33, %c0_34, %c0_35, %c20] : memref<1x1x8x512xbf16, #tpu.memory_space<vmem>>, vector<1x1x8x384xbf16>
    %32 = vector.shape_cast %31 : vector<1x1x8x384xbf16> to vector<8x384xbf16>
    %c5 = arith.constant 5 : index
    %c0_36 = arith.constant 0 : index
    %c0_37 = arith.constant 0 : index
    %33 = vector.load %arg5[%c5, %c0_36, %c0_37] : memref<27x8x8xbf16, #tpu.memory_space<vmem>>, vector<1x8x8xbf16>
    %34 = vector.shape_cast %33 : vector<1x8x8xbf16> to vector<8x8xbf16>
    %cst_38 = arith.constant dense<0.000000e+00> : vector<8x384xf32>
    %35 = tpu.matmul %34, %32, %cst_38 {dimension_numbers = #tpu.dot_dimension_numbers<[1], [0], [0], [1], [0, 0, 1, 1], [], []>} : vector<8x8xbf16>, vector<8x384xbf16>, vector<8x384xf32> -> vector<8x384xf32>
    %36 = arith.addf %30, %35 : vector<8x384xf32>
    %c0_39 = arith.constant 0 : index
    %c0_40 = arith.constant 0 : index
    %c0_41 = arith.constant 0 : index
    %c36 = arith.constant 36 : index
    %37 = vector.load %arg2[%c0_39, %c0_40, %c0_41, %c36] : memref<1x1x8x512xbf16, #tpu.memory_space<vmem>>, vector<1x1x8x384xbf16>
    %38 = vector.shape_cast %37 : vector<1x1x8x384xbf16> to vector<8x384xbf16>
    %c6 = arith.constant 6 : index
    %c0_42 = arith.constant 0 : index
    %c0_43 = arith.constant 0 : index
    %39 = vector.load %arg5[%c6, %c0_42, %c0_43] : memref<27x8x8xbf16, #tpu.memory_space<vmem>>, vector<1x8x8xbf16>
    %40 = vector.shape_cast %39 : vector<1x8x8xbf16> to vector<8x8xbf16>
    %cst_44 = arith.constant dense<0.000000e+00> : vector<8x384xf32>
    %41 = tpu.matmul %40, %38, %cst_44 {dimension_numbers = #tpu.dot_dimension_numbers<[1], [0], [0], [1], [0, 0, 1, 1], [], []>} : vector<8x8xbf16>, vector<8x384xbf16>, vector<8x384xf32> -> vector<8x384xf32>
    %42 = arith.addf %36, %41 : vector<8x384xf32>
    %c0_45 = arith.constant 0 : index
    %c0_46 = arith.constant 0 : index
    %c0_47 = arith.constant 0 : index
    %c37 = arith.constant 37 : index
    %43 = vector.load %arg2[%c0_45, %c0_46, %c0_47, %c37] : memref<1x1x8x512xbf16, #tpu.memory_space<vmem>>, vector<1x1x8x384xbf16>
    %44 = vector.shape_cast %43 : vector<1x1x8x384xbf16> to vector<8x384xbf16>
    %c7 = arith.constant 7 : index
    %c0_48 = arith.constant 0 : index
    %c0_49 = arith.constant 0 : index
    %45 = vector.load %arg5[%c7, %c0_48, %c0_49] : memref<27x8x8xbf16, #tpu.memory_space<vmem>>, vector<1x8x8xbf16>
    %46 = vector.shape_cast %45 : vector<1x8x8xbf16> to vector<8x8xbf16>
    %cst_50 = arith.constant dense<0.000000e+00> : vector<8x384xf32>
    %47 = tpu.matmul %46, %44, %cst_50 {dimension_numbers = #tpu.dot_dimension_numbers<[1], [0], [0], [1], [0, 0, 1, 1], [], []>} : vector<8x8xbf16>, vector<8x384xbf16>, vector<8x384xf32> -> vector<8x384xf32>
    %48 = arith.addf %42, %47 : vector<8x384xf32>
    %c0_51 = arith.constant 0 : index
    %c0_52 = arith.constant 0 : index
    %c0_53 = arith.constant 0 : index
    %c38 = arith.constant 38 : index
    %49 = vector.load %arg2[%c0_51, %c0_52, %c0_53, %c38] : memref<1x1x8x512xbf16, #tpu.memory_space<vmem>>, vector<1x1x8x384xbf16>
    %50 = vector.shape_cast %49 : vector<1x1x8x384xbf16> to vector<8x384xbf16>
    %c8 = arith.constant 8 : index
    %c0_54 = arith.constant 0 : index
    %c0_55 = arith.constant 0 : index
    %51 = vector.load %arg5[%c8, %c0_54, %c0_55] : memref<27x8x8xbf16, #tpu.memory_space<vmem>>, vector<1x8x8xbf16>
    %52 = vector.shape_cast %51 : vector<1x8x8xbf16> to vector<8x8xbf16>
    %cst_56 = arith.constant dense<0.000000e+00> : vector<8x384xf32>
    %53 = tpu.matmul %52, %50, %cst_56 {dimension_numbers = #tpu.dot_dimension_numbers<[1], [0], [0], [1], [0, 0, 1, 1], [], []>} : vector<8x8xbf16>, vector<8x384xbf16>, vector<8x384xf32> -> vector<8x384xf32>
    %54 = arith.addf %48, %53 : vector<8x384xf32>
    %c0_57 = arith.constant 0 : index
    %c0_58 = arith.constant 0 : index
    %c0_59 = arith.constant 0 : index
    %c0_60 = arith.constant 0 : index
    %55 = vector.load %arg3[%c0_57, %c0_58, %c0_59, %c0_60] : memref<1x1x8x512xbf16, #tpu.memory_space<vmem>>, vector<1x1x8x384xbf16>
    %56 = vector.shape_cast %55 : vector<1x1x8x384xbf16> to vector<8x384xbf16>
    %c9 = arith.constant 9 : index
    %c0_61 = arith.constant 0 : index
    %c0_62 = arith.constant 0 : index
    %57 = vector.load %arg5[%c9, %c0_61, %c0_62] : memref<27x8x8xbf16, #tpu.memory_space<vmem>>, vector<1x8x8xbf16>
    %58 = vector.shape_cast %57 : vector<1x8x8xbf16> to vector<8x8xbf16>
    %cst_63 = arith.constant dense<0.000000e+00> : vector<8x384xf32>
    %59 = tpu.matmul %58, %56, %cst_63 {dimension_numbers = #tpu.dot_dimension_numbers<[1], [0], [0], [1], [0, 0, 1, 1], [], []>} : vector<8x8xbf16>, vector<8x384xbf16>, vector<8x384xf32> -> vector<8x384xf32>
    %60 = arith.addf %54, %59 : vector<8x384xf32>
    %c0_64 = arith.constant 0 : index
    %c0_65 = arith.constant 0 : index
    %c0_66 = arith.constant 0 : index
    %c1_67 = arith.constant 1 : index
    %61 = vector.load %arg3[%c0_64, %c0_65, %c0_66, %c1_67] : memref<1x1x8x512xbf16, #tpu.memory_space<vmem>>, vector<1x1x8x384xbf16>
    %62 = vector.shape_cast %61 : vector<1x1x8x384xbf16> to vector<8x384xbf16>
    %c10 = arith.constant 10 : index
    %c0_68 = arith.constant 0 : index
    %c0_69 = arith.constant 0 : index
    %63 = vector.load %arg5[%c10, %c0_68, %c0_69] : memref<27x8x8xbf16, #tpu.memory_space<vmem>>, vector<1x8x8xbf16>
    %64 = vector.shape_cast %63 : vector<1x8x8xbf16> to vector<8x8xbf16>
    %cst_70 = arith.constant dense<0.000000e+00> : vector<8x384xf32>
    %65 = tpu.matmul %64, %62, %cst_70 {dimension_numbers = #tpu.dot_dimension_numbers<[1], [0], [0], [1], [0, 0, 1, 1], [], []>} : vector<8x8xbf16>, vector<8x384xbf16>, vector<8x384xf32> -> vector<8x384xf32>
    %66 = arith.addf %60, %65 : vector<8x384xf32>
    %c0_71 = arith.constant 0 : index
    %c0_72 = arith.constant 0 : index
    %c0_73 = arith.constant 0 : index
    %c2_74 = arith.constant 2 : index
    %67 = vector.load %arg3[%c0_71, %c0_72, %c0_73, %c2_74] : memref<1x1x8x512xbf16, #tpu.memory_space<vmem>>, vector<1x1x8x384xbf16>
    %68 = vector.shape_cast %67 : vector<1x1x8x384xbf16> to vector<8x384xbf16>
    %c11 = arith.constant 11 : index
    %c0_75 = arith.constant 0 : index
    %c0_76 = arith.constant 0 : index
    %69 = vector.load %arg5[%c11, %c0_75, %c0_76] : memref<27x8x8xbf16, #tpu.memory_space<vmem>>, vector<1x8x8xbf16>
    %70 = vector.shape_cast %69 : vector<1x8x8xbf16> to vector<8x8xbf16>
    %cst_77 = arith.constant dense<0.000000e+00> : vector<8x384xf32>
    %71 = tpu.matmul %70, %68, %cst_77 {dimension_numbers = #tpu.dot_dimension_numbers<[1], [0], [0], [1], [0, 0, 1, 1], [], []>} : vector<8x8xbf16>, vector<8x384xbf16>, vector<8x384xf32> -> vector<8x384xf32>
    %72 = arith.addf %66, %71 : vector<8x384xf32>
    %c0_78 = arith.constant 0 : index
    %c0_79 = arith.constant 0 : index
    %c0_80 = arith.constant 0 : index
    %c18_81 = arith.constant 18 : index
    %73 = vector.load %arg3[%c0_78, %c0_79, %c0_80, %c18_81] : memref<1x1x8x512xbf16, #tpu.memory_space<vmem>>, vector<1x1x8x384xbf16>
    %74 = vector.shape_cast %73 : vector<1x1x8x384xbf16> to vector<8x384xbf16>
    %c12 = arith.constant 12 : index
    %c0_82 = arith.constant 0 : index
    %c0_83 = arith.constant 0 : index
    %75 = vector.load %arg5[%c12, %c0_82, %c0_83] : memref<27x8x8xbf16, #tpu.memory_space<vmem>>, vector<1x8x8xbf16>
    %76 = vector.shape_cast %75 : vector<1x8x8xbf16> to vector<8x8xbf16>
    %cst_84 = arith.constant dense<0.000000e+00> : vector<8x384xf32>
    %77 = tpu.matmul %76, %74, %cst_84 {dimension_numbers = #tpu.dot_dimension_numbers<[1], [0], [0], [1], [0, 0, 1, 1], [], []>} : vector<8x8xbf16>, vector<8x384xbf16>, vector<8x384xf32> -> vector<8x384xf32>
    %78 = arith.addf %72, %77 : vector<8x384xf32>
    %c0_85 = arith.constant 0 : index
    %c0_86 = arith.constant 0 : index
    %c0_87 = arith.constant 0 : index
    %c19_88 = arith.constant 19 : index
    %79 = vector.load %arg3[%c0_85, %c0_86, %c0_87, %c19_88] : memref<1x1x8x512xbf16, #tpu.memory_space<vmem>>, vector<1x1x8x384xbf16>
    %80 = vector.shape_cast %79 : vector<1x1x8x384xbf16> to vector<8x384xbf16>
    %c13 = arith.constant 13 : index
    %c0_89 = arith.constant 0 : index
    %c0_90 = arith.constant 0 : index
    %81 = vector.load %arg5[%c13, %c0_89, %c0_90] : memref<27x8x8xbf16, #tpu.memory_space<vmem>>, vector<1x8x8xbf16>
    %82 = vector.shape_cast %81 : vector<1x8x8xbf16> to vector<8x8xbf16>
    %cst_91 = arith.constant dense<0.000000e+00> : vector<8x384xf32>
    %83 = tpu.matmul %82, %80, %cst_91 {dimension_numbers = #tpu.dot_dimension_numbers<[1], [0], [0], [1], [0, 0, 1, 1], [], []>} : vector<8x8xbf16>, vector<8x384xbf16>, vector<8x384xf32> -> vector<8x384xf32>
    %84 = arith.addf %78, %83 : vector<8x384xf32>
    %c0_92 = arith.constant 0 : index
    %c0_93 = arith.constant 0 : index
    %c0_94 = arith.constant 0 : index
    %c20_95 = arith.constant 20 : index
    %85 = vector.load %arg3[%c0_92, %c0_93, %c0_94, %c20_95] : memref<1x1x8x512xbf16, #tpu.memory_space<vmem>>, vector<1x1x8x384xbf16>
    %86 = vector.shape_cast %85 : vector<1x1x8x384xbf16> to vector<8x384xbf16>
    %c14 = arith.constant 14 : index
    %c0_96 = arith.constant 0 : index
    %c0_97 = arith.constant 0 : index
    %87 = vector.load %arg5[%c14, %c0_96, %c0_97] : memref<27x8x8xbf16, #tpu.memory_space<vmem>>, vector<1x8x8xbf16>
    %88 = vector.shape_cast %87 : vector<1x8x8xbf16> to vector<8x8xbf16>
    %cst_98 = arith.constant dense<0.000000e+00> : vector<8x384xf32>
    %89 = tpu.matmul %88, %86, %cst_98 {dimension_numbers = #tpu.dot_dimension_numbers<[1], [0], [0], [1], [0, 0, 1, 1], [], []>} : vector<8x8xbf16>, vector<8x384xbf16>, vector<8x384xf32> -> vector<8x384xf32>
    %90 = arith.addf %84, %89 : vector<8x384xf32>
    %c0_99 = arith.constant 0 : index
    %c0_100 = arith.constant 0 : index
    %c0_101 = arith.constant 0 : index
    %c36_102 = arith.constant 36 : index
    %91 = vector.load %arg3[%c0_99, %c0_100, %c0_101, %c36_102] : memref<1x1x8x512xbf16, #tpu.memory_space<vmem>>, vector<1x1x8x384xbf16>
    %92 = vector.shape_cast %91 : vector<1x1x8x384xbf16> to vector<8x384xbf16>
    %c15 = arith.constant 15 : index
    %c0_103 = arith.constant 0 : index
    %c0_104 = arith.constant 0 : index
    %93 = vector.load %arg5[%c15, %c0_103, %c0_104] : memref<27x8x8xbf16, #tpu.memory_space<vmem>>, vector<1x8x8xbf16>
    %94 = vector.shape_cast %93 : vector<1x8x8xbf16> to vector<8x8xbf16>
    %cst_105 = arith.constant dense<0.000000e+00> : vector<8x384xf32>
    %95 = tpu.matmul %94, %92, %cst_105 {dimension_numbers = #tpu.dot_dimension_numbers<[1], [0], [0], [1], [0, 0, 1, 1], [], []>} : vector<8x8xbf16>, vector<8x384xbf16>, vector<8x384xf32> -> vector<8x384xf32>
    %96 = arith.addf %90, %95 : vector<8x384xf32>
    %c0_106 = arith.constant 0 : index
    %c0_107 = arith.constant 0 : index
    %c0_108 = arith.constant 0 : index
    %c37_109 = arith.constant 37 : index
    %97 = vector.load %arg3[%c0_106, %c0_107, %c0_108, %c37_109] : memref<1x1x8x512xbf16, #tpu.memory_space<vmem>>, vector<1x1x8x384xbf16>
    %98 = vector.shape_cast %97 : vector<1x1x8x384xbf16> to vector<8x384xbf16>
    %c16 = arith.constant 16 : index
    %c0_110 = arith.constant 0 : index
    %c0_111 = arith.constant 0 : index
    %99 = vector.load %arg5[%c16, %c0_110, %c0_111] : memref<27x8x8xbf16, #tpu.memory_space<vmem>>, vector<1x8x8xbf16>
    %100 = vector.shape_cast %99 : vector<1x8x8xbf16> to vector<8x8xbf16>
    %cst_112 = arith.constant dense<0.000000e+00> : vector<8x384xf32>
    %101 = tpu.matmul %100, %98, %cst_112 {dimension_numbers = #tpu.dot_dimension_numbers<[1], [0], [0], [1], [0, 0, 1, 1], [], []>} : vector<8x8xbf16>, vector<8x384xbf16>, vector<8x384xf32> -> vector<8x384xf32>
    %102 = arith.addf %96, %101 : vector<8x384xf32>
    %c0_113 = arith.constant 0 : index
    %c0_114 = arith.constant 0 : index
    %c0_115 = arith.constant 0 : index
    %c38_116 = arith.constant 38 : index
    %103 = vector.load %arg3[%c0_113, %c0_114, %c0_115, %c38_116] : memref<1x1x8x512xbf16, #tpu.memory_space<vmem>>, vector<1x1x8x384xbf16>
    %104 = vector.shape_cast %103 : vector<1x1x8x384xbf16> to vector<8x384xbf16>
    %c17 = arith.constant 17 : index
    %c0_117 = arith.constant 0 : index
    %c0_118 = arith.constant 0 : index
    %105 = vector.load %arg5[%c17, %c0_117, %c0_118] : memref<27x8x8xbf16, #tpu.memory_space<vmem>>, vector<1x8x8xbf16>
    %106 = vector.shape_cast %105 : vector<1x8x8xbf16> to vector<8x8xbf16>
    %cst_119 = arith.constant dense<0.000000e+00> : vector<8x384xf32>
    %107 = tpu.matmul %106, %104, %cst_119 {dimension_numbers = #tpu.dot_dimension_numbers<[1], [0], [0], [1], [0, 0, 1, 1], [], []>} : vector<8x8xbf16>, vector<8x384xbf16>, vector<8x384xf32> -> vector<8x384xf32>
    %108 = arith.addf %102, %107 : vector<8x384xf32>
    %c0_120 = arith.constant 0 : index
    %c0_121 = arith.constant 0 : index
    %c0_122 = arith.constant 0 : index
    %c0_123 = arith.constant 0 : index
    %109 = vector.load %arg4[%c0_120, %c0_121, %c0_122, %c0_123] : memref<1x1x8x512xbf16, #tpu.memory_space<vmem>>, vector<1x1x8x384xbf16>
    %110 = vector.shape_cast %109 : vector<1x1x8x384xbf16> to vector<8x384xbf16>
    %c18_124 = arith.constant 18 : index
    %c0_125 = arith.constant 0 : index
    %c0_126 = arith.constant 0 : index
    %111 = vector.load %arg5[%c18_124, %c0_125, %c0_126] : memref<27x8x8xbf16, #tpu.memory_space<vmem>>, vector<1x8x8xbf16>
    %112 = vector.shape_cast %111 : vector<1x8x8xbf16> to vector<8x8xbf16>
    %cst_127 = arith.constant dense<0.000000e+00> : vector<8x384xf32>
    %113 = tpu.matmul %112, %110, %cst_127 {dimension_numbers = #tpu.dot_dimension_numbers<[1], [0], [0], [1], [0, 0, 1, 1], [], []>} : vector<8x8xbf16>, vector<8x384xbf16>, vector<8x384xf32> -> vector<8x384xf32>
    %114 = arith.addf %108, %113 : vector<8x384xf32>
    %c0_128 = arith.constant 0 : index
    %c0_129 = arith.constant 0 : index
    %c0_130 = arith.constant 0 : index
    %c1_131 = arith.constant 1 : index
    %115 = vector.load %arg4[%c0_128, %c0_129, %c0_130, %c1_131] : memref<1x1x8x512xbf16, #tpu.memory_space<vmem>>, vector<1x1x8x384xbf16>
    %116 = vector.shape_cast %115 : vector<1x1x8x384xbf16> to vector<8x384xbf16>
    %c19_132 = arith.constant 19 : index
    %c0_133 = arith.constant 0 : index
    %c0_134 = arith.constant 0 : index
    %117 = vector.load %arg5[%c19_132, %c0_133, %c0_134] : memref<27x8x8xbf16, #tpu.memory_space<vmem>>, vector<1x8x8xbf16>
    %118 = vector.shape_cast %117 : vector<1x8x8xbf16> to vector<8x8xbf16>
    %cst_135 = arith.constant dense<0.000000e+00> : vector<8x384xf32>
    %119 = tpu.matmul %118, %116, %cst_135 {dimension_numbers = #tpu.dot_dimension_numbers<[1], [0], [0], [1], [0, 0, 1, 1], [], []>} : vector<8x8xbf16>, vector<8x384xbf16>, vector<8x384xf32> -> vector<8x384xf32>
    %120 = arith.addf %114, %119 : vector<8x384xf32>
    %c0_136 = arith.constant 0 : index
    %c0_137 = arith.constant 0 : index
    %c0_138 = arith.constant 0 : index
    %c2_139 = arith.constant 2 : index
    %121 = vector.load %arg4[%c0_136, %c0_137, %c0_138, %c2_139] : memref<1x1x8x512xbf16, #tpu.memory_space<vmem>>, vector<1x1x8x384xbf16>
    %122 = vector.shape_cast %121 : vector<1x1x8x384xbf16> to vector<8x384xbf16>
    %c20_140 = arith.constant 20 : index
    %c0_141 = arith.constant 0 : index
    %c0_142 = arith.constant 0 : index
    %123 = vector.load %arg5[%c20_140, %c0_141, %c0_142] : memref<27x8x8xbf16, #tpu.memory_space<vmem>>, vector<1x8x8xbf16>
    %124 = vector.shape_cast %123 : vector<1x8x8xbf16> to vector<8x8xbf16>
    %cst_143 = arith.constant dense<0.000000e+00> : vector<8x384xf32>
    %125 = tpu.matmul %124, %122, %cst_143 {dimension_numbers = #tpu.dot_dimension_numbers<[1], [0], [0], [1], [0, 0, 1, 1], [], []>} : vector<8x8xbf16>, vector<8x384xbf16>, vector<8x384xf32> -> vector<8x384xf32>
    %126 = arith.addf %120, %125 : vector<8x384xf32>
    %c0_144 = arith.constant 0 : index
    %c0_145 = arith.constant 0 : index
    %c0_146 = arith.constant 0 : index
    %c18_147 = arith.constant 18 : index
    %127 = vector.load %arg4[%c0_144, %c0_145, %c0_146, %c18_147] : memref<1x1x8x512xbf16, #tpu.memory_space<vmem>>, vector<1x1x8x384xbf16>
    %128 = vector.shape_cast %127 : vector<1x1x8x384xbf16> to vector<8x384xbf16>
    %c21 = arith.constant 21 : index
    %c0_148 = arith.constant 0 : index
    %c0_149 = arith.constant 0 : index
    %129 = vector.load %arg5[%c21, %c0_148, %c0_149] : memref<27x8x8xbf16, #tpu.memory_space<vmem>>, vector<1x8x8xbf16>
    %130 = vector.shape_cast %129 : vector<1x8x8xbf16> to vector<8x8xbf16>
    %cst_150 = arith.constant dense<0.000000e+00> : vector<8x384xf32>
    %131 = tpu.matmul %130, %128, %cst_150 {dimension_numbers = #tpu.dot_dimension_numbers<[1], [0], [0], [1], [0, 0, 1, 1], [], []>} : vector<8x8xbf16>, vector<8x384xbf16>, vector<8x384xf32> -> vector<8x384xf32>
    %132 = arith.addf %126, %131 : vector<8x384xf32>
    %c0_151 = arith.constant 0 : index
    %c0_152 = arith.constant 0 : index
    %c0_153 = arith.constant 0 : index
    %c19_154 = arith.constant 19 : index
    %133 = vector.load %arg4[%c0_151, %c0_152, %c0_153, %c19_154] : memref<1x1x8x512xbf16, #tpu.memory_space<vmem>>, vector<1x1x8x384xbf16>
    %134 = vector.shape_cast %133 : vector<1x1x8x384xbf16> to vector<8x384xbf16>
    %c22 = arith.constant 22 : index
    %c0_155 = arith.constant 0 : index
    %c0_156 = arith.constant 0 : index
    %135 = vector.load %arg5[%c22, %c0_155, %c0_156] : memref<27x8x8xbf16, #tpu.memory_space<vmem>>, vector<1x8x8xbf16>
    %136 = vector.shape_cast %135 : vector<1x8x8xbf16> to vector<8x8xbf16>
    %cst_157 = arith.constant dense<0.000000e+00> : vector<8x384xf32>
    %137 = tpu.matmul %136, %134, %cst_157 {dimension_numbers = #tpu.dot_dimension_numbers<[1], [0], [0], [1], [0, 0, 1, 1], [], []>} : vector<8x8xbf16>, vector<8x384xbf16>, vector<8x384xf32> -> vector<8x384xf32>
    %138 = arith.addf %132, %137 : vector<8x384xf32>
    %c0_158 = arith.constant 0 : index
    %c0_159 = arith.constant 0 : index
    %c0_160 = arith.constant 0 : index
    %c20_161 = arith.constant 20 : index
    %139 = vector.load %arg4[%c0_158, %c0_159, %c0_160, %c20_161] : memref<1x1x8x512xbf16, #tpu.memory_space<vmem>>, vector<1x1x8x384xbf16>
    %140 = vector.shape_cast %139 : vector<1x1x8x384xbf16> to vector<8x384xbf16>
    %c23 = arith.constant 23 : index
    %c0_162 = arith.constant 0 : index
    %c0_163 = arith.constant 0 : index
    %141 = vector.load %arg5[%c23, %c0_162, %c0_163] : memref<27x8x8xbf16, #tpu.memory_space<vmem>>, vector<1x8x8xbf16>
    %142 = vector.shape_cast %141 : vector<1x8x8xbf16> to vector<8x8xbf16>
    %cst_164 = arith.constant dense<0.000000e+00> : vector<8x384xf32>
    %143 = tpu.matmul %142, %140, %cst_164 {dimension_numbers = #tpu.dot_dimension_numbers<[1], [0], [0], [1], [0, 0, 1, 1], [], []>} : vector<8x8xbf16>, vector<8x384xbf16>, vector<8x384xf32> -> vector<8x384xf32>
    %144 = arith.addf %138, %143 : vector<8x384xf32>
    %c0_165 = arith.constant 0 : index
    %c0_166 = arith.constant 0 : index
    %c0_167 = arith.constant 0 : index
    %c36_168 = arith.constant 36 : index
    %145 = vector.load %arg4[%c0_165, %c0_166, %c0_167, %c36_168] : memref<1x1x8x512xbf16, #tpu.memory_space<vmem>>, vector<1x1x8x384xbf16>
    %146 = vector.shape_cast %145 : vector<1x1x8x384xbf16> to vector<8x384xbf16>
    %c24 = arith.constant 24 : index
    %c0_169 = arith.constant 0 : index
    %c0_170 = arith.constant 0 : index
    %147 = vector.load %arg5[%c24, %c0_169, %c0_170] : memref<27x8x8xbf16, #tpu.memory_space<vmem>>, vector<1x8x8xbf16>
    %148 = vector.shape_cast %147 : vector<1x8x8xbf16> to vector<8x8xbf16>
    %cst_171 = arith.constant dense<0.000000e+00> : vector<8x384xf32>
    %149 = tpu.matmul %148, %146, %cst_171 {dimension_numbers = #tpu.dot_dimension_numbers<[1], [0], [0], [1], [0, 0, 1, 1], [], []>} : vector<8x8xbf16>, vector<8x384xbf16>, vector<8x384xf32> -> vector<8x384xf32>
    %150 = arith.addf %144, %149 : vector<8x384xf32>
    %c0_172 = arith.constant 0 : index
    %c0_173 = arith.constant 0 : index
    %c0_174 = arith.constant 0 : index
    %c37_175 = arith.constant 37 : index
    %151 = vector.load %arg4[%c0_172, %c0_173, %c0_174, %c37_175] : memref<1x1x8x512xbf16, #tpu.memory_space<vmem>>, vector<1x1x8x384xbf16>
    %152 = vector.shape_cast %151 : vector<1x1x8x384xbf16> to vector<8x384xbf16>
    %c25 = arith.constant 25 : index
    %c0_176 = arith.constant 0 : index
    %c0_177 = arith.constant 0 : index
    %153 = vector.load %arg5[%c25, %c0_176, %c0_177] : memref<27x8x8xbf16, #tpu.memory_space<vmem>>, vector<1x8x8xbf16>
    %154 = vector.shape_cast %153 : vector<1x8x8xbf16> to vector<8x8xbf16>
    %cst_178 = arith.constant dense<0.000000e+00> : vector<8x384xf32>
    %155 = tpu.matmul %154, %152, %cst_178 {dimension_numbers = #tpu.dot_dimension_numbers<[1], [0], [0], [1], [0, 0, 1, 1], [], []>} : vector<8x8xbf16>, vector<8x384xbf16>, vector<8x384xf32> -> vector<8x384xf32>
    %156 = arith.addf %150, %155 : vector<8x384xf32>
    %c0_179 = arith.constant 0 : index
    %c0_180 = arith.constant 0 : index
    %c0_181 = arith.constant 0 : index
    %c38_182 = arith.constant 38 : index
    %157 = vector.load %arg4[%c0_179, %c0_180, %c0_181, %c38_182] : memref<1x1x8x512xbf16, #tpu.memory_space<vmem>>, vector<1x1x8x384xbf16>
    %158 = vector.shape_cast %157 : vector<1x1x8x384xbf16> to vector<8x384xbf16>
    %c26 = arith.constant 26 : index
    %c0_183 = arith.constant 0 : index
    %c0_184 = arith.constant 0 : index
    %159 = vector.load %arg5[%c26, %c0_183, %c0_184] : memref<27x8x8xbf16, #tpu.memory_space<vmem>>, vector<1x8x8xbf16>
    %160 = vector.shape_cast %159 : vector<1x8x8xbf16> to vector<8x8xbf16>
    %cst_185 = arith.constant dense<0.000000e+00> : vector<8x384xf32>
    %161 = tpu.matmul %160, %158, %cst_185 {dimension_numbers = #tpu.dot_dimension_numbers<[1], [0], [0], [1], [0, 0, 1, 1], [], []>} : vector<8x8xbf16>, vector<8x384xbf16>, vector<8x384xf32> -> vector<8x384xf32>
    %162 = arith.addf %156, %161 : vector<8x384xf32>
    %c0_186 = arith.constant 0 : index
    %c0_187 = arith.constant 0 : index
    %163 = vector.load %arg6[%c0_186, %c0_187] : memref<8x1xf32, #tpu.memory_space<vmem>>, vector<8x1xf32>
    %164 = vector.broadcast %163 : vector<8x1xf32> to vector<8x384xf32>
    %165 = arith.addf %162, %164 : vector<8x384xf32>
    %166 = arith.truncf %165 : vector<8x384xf32> to vector<8x384xbf16>
    %c0_188 = arith.constant 0 : index
    %c0_189 = arith.constant 0 : index
    %c0_190 = arith.constant 0 : index
    %c0_191 = arith.constant 0 : index
    %167 = vector.load %arg8[%c0_188, %c0_189, %c0_190, %c0_191] : memref<1x1x8x384xbf16, #tpu.memory_space<vmem>>, vector<1x1x8x384xbf16>
    %168 = vector.shape_cast %167 : vector<1x1x8x384xbf16> to vector<8x384xbf16>
    %169 = vector.shape_cast %166 : vector<8x384xbf16> to vector<1x1x8x384xbf16>
    tpu.vector_store %arg8[%c0_188, %c0_189, %c0_190, %c0_191], %169 {strides = array<i32>} : memref<1x1x8x384xbf16, #tpu.memory_space<vmem>>, vector<1x1x8x384xbf16>,
    %c0_192 = arith.constant 0 : index
    %c0_193 = arith.constant 0 : index
    %170 = vector.load %arg7[%c0_192, %c0_193] : memref<1x384xf32, #tpu.memory_space<vmem>>, vector<1x384xf32>
    %171 = vector.broadcast %170 : vector<1x384xf32> to vector<8x384xf32>
    %172 = arith.mulf %165, %171 : vector<8x384xf32>
    %cst_194 = arith.constant dense<0.000000e+00> : vector<8xf32>
    %173 = vector.multi_reduction <add>, %172, %cst_194 [1] : vector<8x384xf32> to vector<8xf32>
    %174 = vector.shape_cast %173 : vector<8xf32> to vector<8x1xf32>
    %cst_195 = arith.constant 3.906250e-03 : f32
    %175 = vector.broadcast %cst_195 : f32 to vector<8x1xf32>
    %176 = arith.mulf %174, %175 : vector<8x1xf32>
    %177 = vector.broadcast %176 : vector<8x1xf32> to vector<8x384xf32>
    %178 = arith.subf %165, %177 : vector<8x384xf32>
    %179 = vector.broadcast %170 : vector<1x384xf32> to vector<8x384xf32>
    %180 = arith.mulf %178, %179 : vector<8x384xf32>
    %181 = arith.mulf %180, %180 : vector<8x384xf32>
    %cst_196 = arith.constant dense<0.000000e+00> : vector<8xf32>
    %182 = vector.multi_reduction <add>, %181, %cst_196 [1] : vector<8x384xf32> to vector<8xf32>
    %183 = vector.shape_cast %182 : vector<8xf32> to vector<8x1xf32>
    %184 = tpu.concatenate %176, %183 in 1 : vector<8x1xf32>, vector<8x1xf32> -> vector<8x2xf32>
    %c0_197 = arith.constant 0 : index
    %c0_198 = arith.constant 0 : index
    %c0_199 = arith.constant 0 : index
    %c0_200 = arith.constant 0 : index
    %185 = vector.load %arg9[%c0_197, %c0_198, %c0_199, %c0_200] : memref<1x1x8x2xf32, #tpu.memory_space<vmem>>, vector<1x1x8x2xf32>
    %186 = vector.shape_cast %185 : vector<1x1x8x2xf32> to vector<8x2xf32>
    %187 = vector.shape_cast %184 : vector<8x2xf32> to vector<1x1x8x2xf32>
    tpu.vector_store %arg9[%c0_197, %c0_198, %c0_199, %c0_200], %187 {strides = array<i32>} : memref<1x1x8x2xf32, #tpu.memory_space<vmem>>, vector<1x1x8x2xf32>,
    return
  }
  func.func @transform_0(%arg0: i32, %arg1: i32) -> (i32, i32, i32, i32) {
    %c0_i32 = arith.constant 0 : i32
    %0 = arith.addi %arg1, %c0_i32 : i32
    %c0_i32_0 = arith.constant 0 : i32
    %c0_i32_1 = arith.constant 0 : i32
    %c0_i32_2 = arith.constant 0 : i32
    return %arg0, %0, %c0_i32_0, %c0_i32_1 : i32, i32, i32, i32
  }
  func.func @transform_1(%arg0: i32, %arg1: i32) -> (i32, i32, i32, i32) {
    %c1_i32 = arith.constant 1 : i32
    %0 = arith.addi %arg1, %c1_i32 : i32
    %c0_i32 = arith.constant 0 : i32
    %c0_i32_0 = arith.constant 0 : i32
    %c0_i32_1 = arith.constant 0 : i32
    return %arg0, %0, %c0_i32, %c0_i32_0 : i32, i32, i32, i32
  }
  func.func @transform_2(%arg0: i32, %arg1: i32) -> (i32, i32, i32, i32) {
    %c2_i32 = arith.constant 2 : i32
    %0 = arith.addi %arg1, %c2_i32 : i32
    %c0_i32 = arith.constant 0 : i32
    %c0_i32_0 = arith.constant 0 : i32
    %c0_i32_1 = arith.constant 0 : i32
    return %arg0, %0, %c0_i32, %c0_i32_0 : i32, i32, i32, i32
  }
  func.func @transform_3(%arg0: i32, %arg1: i32) -> (i32, i32, i32) {
    %c0_i32 = arith.constant 0 : i32
    %c0_i32_0 = arith.constant 0 : i32
    %c0_i32_1 = arith.constant 0 : i32
    %c0_i32_2 = arith.constant 0 : i32
    return %c0_i32, %c0_i32_0, %c0_i32_1 : i32, i32, i32
  }
  func.func @transform_4(%arg0: i32, %arg1: i32) -> (i32, i32) {
    %c0_i32 = arith.constant 0 : i32
    %c0_i32_0 = arith.constant 0 : i32
    %c0_i32_1 = arith.constant 0 : i32
    return %c0_i32, %c0_i32_0 : i32, i32
  }
  func.func @transform_5(%arg0: i32, %arg1: i32) -> (i32, i32) {
    %c0_i32 = arith.constant 0 : i32
    %c0_i32_0 = arith.constant 0 : i32
    %c0_i32_1 = arith.constant 0 : i32
    return %c0_i32, %c0_i32_0 : i32, i32
  }
  func.func @transform_6(%arg0: i32, %arg1: i32) -> (i32, i32, i32, i32) {
    %c0_i32 = arith.constant 0 : i32
    %c0_i32_0 = arith.constant 0 : i32
    %c0_i32_1 = arith.constant 0 : i32
    return %arg0, %arg1, %c0_i32, %c0_i32_0 : i32, i32, i32, i32
  }
  func.func @transform_7(%arg0: i32, %arg1: i32) -> (i32, i32, i32, i32) {
    %c0_i32 = arith.constant 0 : i32
    %c0_i32_0 = arith.constant 0 : i32
    %c0_i32_1 = arith.constant 0 : i32
    return %arg0, %arg1, %c0_i32, %c0_i32_0 : i32, i32, i32, i32
  }
}

module attributes {stable_mosaic.version = 11 : i64} {
  func.func @_bn_relu_kernel(%arg0: i32, %arg1: memref<16x8x384xbf16, #tpu.memory_space<vmem>>, %arg2: memref<8x1xf32, #tpu.memory_space<vmem>>, %arg3: memref<8x1xf32, #tpu.memory_space<vmem>>, %arg4: memref<16x8x384xf32, #tpu.memory_space<vmem>>) attributes {dimension_semantics = [#tpu.dimension_semantics<parallel>], iteration_bounds = array<i64: 2>, scalar_prefetch = 0 : i64, scratch_operands = 0 : i64, tpu.core_type = #tpu.core_type<tc>, window_params = [{transform_indices = @transform_0, window_bounds = array<i64: 16, 8, 384>}, {pipeline_mode = #tpu.pipeline_mode<synchronous>, transform_indices = @transform_1, window_bounds = array<i64: 8, 1>}, {pipeline_mode = #tpu.pipeline_mode<synchronous>, transform_indices = @transform_2, window_bounds = array<i64: 8, 1>}, {transform_indices = @transform_3, window_bounds = array<i64: 16, 8, 384>}]} {
    %c0 = arith.constant 0 : index
    %c0_0 = arith.constant 0 : index
    %c0_1 = arith.constant 0 : index
    %0 = vector.load %arg1[%c0, %c0_0, %c0_1] : memref<16x8x384xbf16, #tpu.memory_space<vmem>>, vector<16x8x384xbf16>
    %1 = arith.extf %0 : vector<16x8x384xbf16> to vector<16x8x384xf32>
    %c0_2 = arith.constant 0 : index
    %c0_3 = arith.constant 0 : index
    %2 = vector.load %arg2[%c0_2, %c0_3] : memref<8x1xf32, #tpu.memory_space<vmem>>, vector<8x1xf32>
    %3 = vector.shape_cast %2 : vector<8x1xf32> to vector<1x8x1xf32>
    %4 = vector.broadcast %3 : vector<1x8x1xf32> to vector<16x8x384xf32>
    %5 = arith.mulf %1, %4 : vector<16x8x384xf32>
    %c0_4 = arith.constant 0 : index
    %c0_5 = arith.constant 0 : index
    %6 = vector.load %arg3[%c0_4, %c0_5] : memref<8x1xf32, #tpu.memory_space<vmem>>, vector<8x1xf32>
    %7 = vector.shape_cast %6 : vector<8x1xf32> to vector<1x8x1xf32>
    %8 = vector.broadcast %7 : vector<1x8x1xf32> to vector<16x8x384xf32>
    %9 = arith.addf %5, %8 : vector<16x8x384xf32>
    %cst = arith.constant 0.000000e+00 : f32
    %10 = vector.broadcast %cst : f32 to vector<16x8x384xf32>
    %11 = arith.maximumf %9, %10 : vector<16x8x384xf32>
    %c0_6 = arith.constant 0 : index
    %c0_7 = arith.constant 0 : index
    %c0_8 = arith.constant 0 : index
    %12 = vector.load %arg4[%c0_6, %c0_7, %c0_8] : memref<16x8x384xf32, #tpu.memory_space<vmem>>, vector<16x8x384xf32>
    tpu.vector_store %arg4[%c0_6, %c0_7, %c0_8], %11 {strides = array<i32>} : memref<16x8x384xf32, #tpu.memory_space<vmem>>, vector<16x8x384xf32>,
    return
  }
  func.func @transform_0(%arg0: i32) -> (i32, i32, i32) {
    %c0_i32 = arith.constant 0 : i32
    %c0_i32_0 = arith.constant 0 : i32
    %c0_i32_1 = arith.constant 0 : i32
    return %arg0, %c0_i32, %c0_i32_0 : i32, i32, i32
  }
  func.func @transform_1(%arg0: i32) -> (i32, i32) {
    %c0_i32 = arith.constant 0 : i32
    %c0_i32_0 = arith.constant 0 : i32
    %c0_i32_1 = arith.constant 0 : i32
    return %c0_i32, %c0_i32_0 : i32, i32
  }
  func.func @transform_2(%arg0: i32) -> (i32, i32) {
    %c0_i32 = arith.constant 0 : i32
    %c0_i32_0 = arith.constant 0 : i32
    %c0_i32_1 = arith.constant 0 : i32
    return %c0_i32, %c0_i32_0 : i32, i32
  }
  func.func @transform_3(%arg0: i32) -> (i32, i32, i32) {
    %c0_i32 = arith.constant 0 : i32
    %c0_i32_0 = arith.constant 0 : i32
    %c0_i32_1 = arith.constant 0 : i32
    return %arg0, %c0_i32, %c0_i32_0 : i32, i32, i32
  }
}

</mosaic_0001>

<bundles_post_ra>
// kernel: conv3d_block.3
= control target key start
LH: loop header
LB: loop body
LE: loop exit
PB: predicated region body
PF: predicated region fallthrough
CT: control target
= control target key end

     0   :  { %s573_s12 = smov 0   ;;  %s920_s0 = inlined_call_operand.vmem [shape: bf16[32,8,384], index: 0, kind: input, shape index: {}]   ;;  %s921_s1 = inlined_call_operand.vmem [shape: f32[8,1], index: 1, kind: input, shape index: {}]   ;;  %s922_s2 = inlined_call_operand.vmem [shape: f32[8,1], index: 2, kind: input, shape index: {}]   ;;  %s923_s3 = inlined_call_operand.vmem [shape: f32[32,8,384], index: 3, kind: output, shape index: {}]  }
   0x1 LB: > { %s521_s13 = sadd.s32 4294967295, %s550_s12   ;;  %p525_p0 = scmp.ge.s32.totalorder %s550_s12, 1  ;;  %s550_s12 = sphi %s573_s12, %s13_s12  }
   0x2   : > { %p139_p1 = scmp.lt.s32.totalorder %s550_s12, 3 }
   0x4   : > { %p140_p2 = pnand %p525_p0, %p139_p1 }
   0x5   : > { %v259_v0 = vld [vmem:[%s921_s1] sm:$0xff] (!%p140_p2)  ;;  %v552_v1 = vmov (!%p140_p2), 0   ;;  %s526_s18 = sshll.u32 (!%p140_p2), %s521_s13, 4 }
   0x6   : > { %143 = sbr.rel (%p140_p2) target bundleno = 185 (0xb9), region = 32  ;;  %543 = vset.pattern.permute.xlu0 (!%p140_p2), %v552_v1  ;;  %v313_v2 = vld [vmem:[%s922_s2] sm:$0xff] (!%p140_p2)  ;;  %p166_p3 = scmp.lt.s32.totalorder (!%p140_p2), %s526_s18, 31 }
   0x7   : > { %262 = vperm.xlu0 (!%p140_p2), %543, %v259_v0  }
   0xb   : > { %316 = vperm.xlu0 (!%p140_p2), %543, %v313_v2  }
   0xd   : > { %s925_s18 = smov (!%p166_p3, %s526_s18), 31 }
   0xe   : > { %s532_s19 = smul.u32 12, %s925_s18 }
   0xf   : > { %s533_s23 = smul.u32 24, %s925_s18 }
  0x10   : > { %s593_s22 = scalar_lea.vmem %s920_s0, %s532_s19 }
  0x11   : > { %v596_v3 = vld [vmem:[%s593_s22] sm:$0xff]  ;;  %v599_v4 = vld [vmem:[%s593_s22 + $0x8] ss:$12 sps:$4 sm:$0xff]   ;;  %v602_v5 = vld [vmem:[%s593_s22 + $0xc] sm:$0xff]  ;;  %s815_s26 = scalar_lea.vmem %s923_s3, %s533_s23 }
  0x12   : > { %v605_v6 = vld [vmem:[%s593_s22 + $0x18] sm:$0xff]  ;;  %v608_v7 = vld [vmem:[%s593_s22 + $0x20] ss:$12 sps:$4 sm:$0xff]   ;;  %v611_v8 = vld [vmem:[%s593_s22 + $0x24] sm:$0xff]  ;;  %v211_v12 = vunpack.c.l.bf16 %v596_v3  ;;  %v212_v13 = vunpack.c.h.bf16 %v596_v3  ;;  %v213_v14 = vunpack.c.l.bf16 %v599_v4  ;;  %v214_v15 = vunpack.c.l.bf16 %v602_v5 }
  0x13   : > { %v614_v9 = vld [vmem:[%s593_s22 + $0x30] sm:$0xff]  ;;  %v617_v10 = vld [vmem:[%s593_s22 + $0x38] ss:$12 sps:$4 sm:$0xff]   ;;  %v620_v11 = vld [vmem:[%s593_s22 + $0x3c] sm:$0xff]  ;;  %v215_v17 = vunpack.c.h.bf16 %v602_v5  ;;  %v216_v18 = vunpack.c.h.bf16 %v599_v4  ;;  %v217_v19 = vunpack.c.l.bf16 %v605_v6  ;;  %v218_v20 = vunpack.c.h.bf16 %v605_v6 }
  0x14   : > { %v627_v16 = vld [vmem:[%s593_s22 + $0x48] sm:$0xff]  ;;  %v634_v21 = vld [vmem:[%s593_s22 + $0x50] ss:$12 sps:$4 sm:$0xff]   ;;  %v637_v22 = vld [vmem:[%s593_s22 + $0x54] sm:$0xff]  ;;  %v219_v23 = vunpack.c.l.bf16 %v608_v7  ;;  %v220_v24 = vunpack.c.l.bf16 %v611_v8  ;;  %v221_v25 = vunpack.c.h.bf16 %v611_v8  ;;  %v222_v26 = vunpack.c.h.bf16 %v608_v7 }
  0x15   : > { %v644_v27 = vld [vmem:[%s593_s22 + $0x60] sm:$0xff]  ;;  %v647_v28 = vld [vmem:[%s593_s22 + $0x68] ss:$12 sps:$4 sm:$0xff]   ;;  %v650_v29 = vld [vmem:[%s593_s22 + $0x6c] sm:$0xff]  ;;  %v223_v30 = vunpack.c.l.bf16 %v614_v9  ;;  %v224_v31 = vunpack.c.h.bf16 %v614_v9  ;;  %v225_v32 = vunpack.c.l.bf16 %v617_v10  ;;  %v226_v33 = vunpack.c.l.bf16 %v620_v11 }
  0x16   : > { %v657_v34 = vld [vmem:[%s593_s22 + $0x78] sm:$0xff]  ;;  %v227_v35 = vunpack.c.h.bf16 %v620_v11  ;;  %v228_v36 = vunpack.c.h.bf16 %v617_v10  ;;  %v229_v37 = vunpack.c.l.bf16 %v627_v16  ;;  %v230_v38 = vunpack.c.h.bf16 %v627_v16  ;;  %v664_v39 = vld [vmem:[%s593_s22 + $0x80] ss:$12 sps:$4 sm:$0xff]   ;;  %v667_v40 = vld [vmem:[%s593_s22 + $0x84] sm:$0xff] }
  0x17   : > { %v231_v41 = vunpack.c.l.bf16 %v634_v21  ;;  %v232_v42 = vunpack.c.l.bf16 %v637_v22  ;;  %v233_v43 = vunpack.c.h.bf16 %v637_v22  ;;  %v234_v44 = vunpack.c.h.bf16 %v634_v21  ;;  %v674_v45 = vld [vmem:[%s593_s22 + $0x90] sm:$0xff]  ;;  %v677_v46 = vld [vmem:[%s593_s22 + $0x98] ss:$12 sps:$4 sm:$0xff]   ;;  %v680_v47 = vld [vmem:[%s593_s22 + $0x9c] sm:$0xff] }
  0x18   : > { %v235_v48 = vunpack.c.l.bf16 %v644_v27  ;;  %v236_v49 = vunpack.c.h.bf16 %v644_v27  ;;  %v237_v50 = vunpack.c.l.bf16 %v647_v28  ;;  %v238_v51 = vunpack.c.l.bf16 %v650_v29  ;;  %v687_v52 = vld [vmem:[%s593_s22 + $0xa8] sm:$0xff]  ;;  %v694_v57 = vld [vmem:[%s593_s22 + $0xb0] ss:$12 sps:$4 sm:$0xff]   ;;  %v697_v58 = vld [vmem:[%s593_s22 + $0xb4] sm:$0xff] }
  0x19   : > { %v239_v53 = vunpack.c.h.bf16 %v650_v29  ;;  %v240_v54 = vunpack.c.h.bf16 %v647_v28  ;;  %v241_v55 = vunpack.c.l.bf16 %v657_v34  ;;  %v242_v56 = vunpack.c.h.bf16 %v657_v34 }
  0x1a   : > { %v243_v59 = vunpack.c.l.bf16 %v664_v39  ;;  %v244_v60 = vunpack.c.l.bf16 %v667_v40  ;;  %v245_v61 = vunpack.c.h.bf16 %v667_v40  ;;  %v246_v62 = vunpack.c.h.bf16 %v664_v39 }
  0x1b   : > { %v247_v63 = vunpack.c.l.bf16 %v674_v45  ;;  %v248_v0 = vunpack.c.h.bf16 %v674_v45  ;;  %v249_v1 = vunpack.c.l.bf16 %v677_v46  ;;  %v250_v2 = vunpack.c.l.bf16 %v680_v47 }
  0x1c   : > { %v251_v7 = vunpack.c.h.bf16 %v680_v47  ;;  %v252_v8 = vunpack.c.h.bf16 %v677_v46  ;;  %v253_v9 = vunpack.c.l.bf16 %v687_v52  ;;  %v254_v10 = vunpack.c.h.bf16 %v687_v52 }
  0x1d   : > { %v255_v16 = vunpack.c.l.bf16 %v694_v57  ;;  %v256_v21 = vunpack.c.l.bf16 %v697_v58  ;;  %v257_v22 = vunpack.c.h.bf16 %v697_v58  ;;  %v258_v27 = vunpack.c.h.bf16 %v694_v57 }
  0x86   : > { %v263_v11 = vpop.permute.xlu0 %262 }
  0x87   : > { %v265_v28 = vmul.f32 %v263_v11, %v211_v12  ;;  %v266_v29 = vmul.f32 %v263_v11, %v212_v13  ;;  %v267_v34 = vmul.f32 %v263_v11, %v213_v14  ;;  %v268_v39 = vmul.f32 %v263_v11, %v214_v15 }
  0x88   : > { %v269_v40 = vmul.f32 %v263_v11, %v215_v17  ;;  %v270_v45 = vmul.f32 %v263_v11, %v216_v18  ;;  %v271_v46 = vmul.f32 %v263_v11, %v217_v19  ;;  %v272_v12 = vmul.f32 %v263_v11, %v218_v20 }
  0x89   : > { %v273_v3 = vmul.f32 %v263_v11, %v219_v23  ;;  %v274_v13 = vmul.f32 %v263_v11, %v220_v24  ;;  %v275_v47 = vmul.f32 %v263_v11, %v221_v25  ;;  %v276_v52 = vmul.f32 %v263_v11, %v222_v26 }
  0x8a   : > { %v277_v14 = vmul.f32 %v263_v11, %v223_v30  ;;  %v278_v57 = vmul.f32 %v263_v11, %v224_v31  ;;  %v279_v58 = vmul.f32 %v263_v11, %v225_v32  ;;  %v280_v15 = vmul.f32 %v263_v11, %v226_v33 }
  0x8b   : > { %v281_v5 = vmul.f32 %v263_v11, %v227_v35  ;;  %v282_v17 = vmul.f32 %v263_v11, %v228_v36  ;;  %v283_v4 = vmul.f32 %v263_v11, %v229_v37  ;;  %v284_v18 = vmul.f32 %v263_v11, %v230_v38 }
  0x8c   : > { %v285_v19 = vmul.f32 %v263_v11, %v231_v41  ;;  %v286_v6 = vmul.f32 %v263_v11, %v232_v42  ;;  %v287_v20 = vmul.f32 %v263_v11, %v233_v43  ;;  %v288_v23 = vmul.f32 %v263_v11, %v234_v44  ;;  %v317_v42 = vpop.permute.xlu0 %316 }
  0x8d   : > { %v289_v24 = vmul.f32 %v263_v11, %v235_v48  ;;  %v290_v25 = vmul.f32 %v263_v11, %v236_v49  ;;  %v291_v26 = vmul.f32 %v263_v11, %v237_v50  ;;  %v292_v30 = vmul.f32 %v263_v11, %v238_v51 }
  0x8e   : > { %v293_v31 = vmul.f32 %v263_v11, %v239_v53  ;;  %v294_v32 = vmul.f32 %v263_v11, %v240_v54  ;;  %v295_v33 = vmul.f32 %v263_v11, %v241_v55  ;;  %v296_v35 = vmul.f32 %v263_v11, %v242_v56 }
  0x8f   : > { %v297_v36 = vmul.f32 %v263_v11, %v243_v59  ;;  %v298_v37 = vmul.f32 %v263_v11, %v244_v60  ;;  %v299_v38 = vmul.f32 %v263_v11, %v245_v61  ;;  %v300_v41 = vmul.f32 %v263_v11, %v246_v62 }
  0x90   : > { %v301_v43 = vmul.f32 %v263_v11, %v247_v63  ;;  %v302_v44 = vmul.f32 %v263_v11, %v248_v0  ;;  %v303_v48 = vmul.f32 %v263_v11, %v249_v1  ;;  %v304_v49 = vmul.f32 %v263_v11, %v250_v2 }
  0x91   : > { %v305_v50 = vmul.f32 %v263_v11, %v251_v7  ;;  %v306_v51 = vmul.f32 %v263_v11, %v252_v8  ;;  %v307_v53 = vmul.f32 %v263_v11, %v253_v9  ;;  %v308_v54 = vmul.f32 %v263_v11, %v254_v10 }
  0x92   : > { %v309_v55 = vmul.f32 %v263_v11, %v255_v16  ;;  %v310_v56 = vmul.f32 %v263_v11, %v256_v21  ;;  %v311_v59 = vmul.f32 %v263_v11, %v257_v22  ;;  %v312_v60 = vmul.f32 %v263_v11, %v258_v27 }
  0x93   : > { %v319_v61 = vadd.f32 %v317_v42, %v265_v28  ;;  %v320_v62 = vadd.f32 %v317_v42, %v266_v29  ;;  %v321_v63 = vadd.f32 %v317_v42, %v267_v34  ;;  %v322_v0 = vadd.f32 %v317_v42, %v268_v39 }
  0x94   : > { %v731_v1 = vadd.f32 %v317_v42, %v269_v40  ;;  %v733_v2 = vadd.f32 %v317_v42, %v270_v45  ;;  %v735_v7 = vadd.f32 %v317_v42, %v271_v46  ;;  %v737_v8 = vadd.f32 %v317_v42, %v272_v12 }
  0x95   : > { %v739_v9 = vadd.f32 %v317_v42, %v273_v3  ;;  %v741_v10 = vadd.f32 %v317_v42, %v274_v13  ;;  %v743_v16 = vadd.f32 %v317_v42, %v275_v47  ;;  %v745_v21 = vadd.f32 %v317_v42, %v276_v52 }
  0x96   : > { %v747_v11 = vadd.f32 %v317_v42, %v277_v14  ;;  %v749_v22 = vadd.f32 %v317_v42, %v278_v57  ;;  %v751_v27 = vadd.f32 %v317_v42, %v279_v58  ;;  %v753_v28 = vadd.f32 %v317_v42, %v280_v15 }
  0x97   : > { %v755_v29 = vadd.f32 %v317_v42, %v281_v5  ;;  %v757_v34 = vadd.f32 %v317_v42, %v282_v17  ;;  %v759_v39 = vadd.f32 %v317_v42, %v283_v4  ;;  %v761_v40 = vadd.f32 %v317_v42, %v284_v18 }
  0x98   : > { %v763_v45 = vadd.f32 %v317_v42, %v285_v19  ;;  %v765_v46 = vadd.f32 %v317_v42, %v286_v6  ;;  %v767_v12 = vadd.f32 %v317_v42, %v287_v20  ;;  %v769_v3 = vadd.f32 %v317_v42, %v288_v23 }
  0x99   : > { %v771_v13 = vadd.f32 %v317_v42, %v289_v24  ;;  %v773_v47 = vadd.f32 %v317_v42, %v290_v25  ;;  %v775_v52 = vadd.f32 %v317_v42, %v291_v26  ;;  %v777_v14 = vadd.f32 %v317_v42, %v292_v30 }
  0x9a   : > { %v780_v57 = vadd.f32 %v317_v42, %v293_v31  ;;  %v782_v58 = vadd.f32 %v317_v42, %v294_v32  ;;  %v784_v15 = vadd.f32 %v317_v42, %v295_v33  ;;  %v786_v5 = vadd.f32 %v317_v42, %v296_v35 }
  0x9b   : > { %v788_v17 = vadd.f32 %v317_v42, %v297_v36  ;;  %v790_v4 = vadd.f32 %v317_v42, %v298_v37  ;;  %v792_v18 = vadd.f32 %v317_v42, %v299_v38  ;;  %v794_v19 = vadd.f32 %v317_v42, %v300_v41 }
  0x9c   : > { %v796_v6 = vadd.f32 %v317_v42, %v301_v43  ;;  %v798_v20 = vadd.f32 %v317_v42, %v302_v44  ;;  %v800_v23 = vadd.f32 %v317_v42, %v303_v48  ;;  %v802_v24 = vadd.f32 %v317_v42, %v304_v49 }
  0x9d   : > { %v804_v25 = vadd.f32 %v317_v42, %v305_v50  ;;  %v806_v26 = vadd.f32 %v317_v42, %v306_v51  ;;  %v808_v30 = vadd.f32 %v317_v42, %v307_v53  ;;  %v810_v31 = vadd.f32 %v317_v42, %v308_v54 }
  0x9e   : > { %v817_v32 = vadd.f32 %v317_v42, %v309_v55  ;;  %v819_v33 = vadd.f32 %v317_v42, %v310_v56  ;;  %v821_v35 = vadd.f32 %v317_v42, %v311_v59  ;;  %v823_v36 = vadd.f32 %v317_v42, %v312_v60 }
  0x9f   : > { %v367_v37 = vmax.f32 %v319_v61, 0.0  ;;  %v368_v38 = vmax.f32 %v320_v62, 0.0  ;;  %v369_v41 = vmax.f32 %v321_v63, 0.0  ;;  %v370_v43 = vmax.f32 %v322_v0, 0.0 }
  0xa0   : > { %v371_v44 = vmax.f32 %v731_v1, 0.0  ;;  %v372_v48 = vmax.f32 %v733_v2, 0.0  ;;  %v373_v49 = vmax.f32 %v735_v7, 0.0  ;;  %v374_v50 = vmax.f32 %v737_v8, 0.0 }
  0xa1   : > { %v375_v42 = vmax.f32 %v739_v9, 0.0  ;;  %v376_v51 = vmax.f32 %v741_v10, 0.0  ;;  %v377_v53 = vmax.f32 %v743_v16, 0.0  ;;  %v378_v54 = vmax.f32 %v745_v21, 0.0  ;;  %415 = vst [vmem:[%s815_s26] sm:$0xff] %v367_v37  ;;  %416 = vst [vmem:[%s815_s26 + $0x8] sm:$0xff] %v368_v38 }
  0xa2   : > { %417 = vst [vmem:[%s815_s26 + $0x10] sm:$0xff] %v369_v41  ;;  %418 = vst [vmem:[%s815_s26 + $0x18] sm:$0xff] %v370_v43  ;;  %v379_v55 = vmax.f32 %v747_v11, 0.0  ;;  %v380_v56 = vmax.f32 %v749_v22, 0.0  ;;  %v381_v59 = vmax.f32 %v751_v27, 0.0  ;;  %v382_v60 = vmax.f32 %v753_v28, 0.0 }
  0xa3   : > { %419 = vst [vmem:[%s815_s26 + $0x20] sm:$0xff] %v371_v44  ;;  %420 = vst [vmem:[%s815_s26 + $0x28] sm:$0xff] %v372_v48  ;;  %v383_v61 = vmax.f32 %v755_v29, 0.0  ;;  %v384_v62 = vmax.f32 %v757_v34, 0.0  ;;  %v385_v63 = vmax.f32 %v759_v39, 0.0  ;;  %v386_v0 = vmax.f32 %v761_v40, 0.0 }
  0xa4   : > { %421 = vst [vmem:[%s815_s26 + $0x30] sm:$0xff] %v373_v49  ;;  %422 = vst [vmem:[%s815_s26 + $0x38] sm:$0xff] %v374_v50  ;;  %v387_v1 = vmax.f32 %v763_v45, 0.0  ;;  %v388_v2 = vmax.f32 %v765_v46, 0.0  ;;  %v389_v7 = vmax.f32 %v767_v12, 0.0  ;;  %v390_v8 = vmax.f32 %v769_v3, 0.0 }
  0xa5   : > { %423 = vst [vmem:[%s815_s26 + $0x40] sm:$0xff] %v375_v42  ;;  %424 = vst [vmem:[%s815_s26 + $0x48] sm:$0xff] %v376_v51  ;;  %v391_v9 = vmax.f32 %v771_v13, 0.0  ;;  %v392_v10 = vmax.f32 %v773_v47, 0.0  ;;  %v393_v16 = vmax.f32 %v775_v52, 0.0  ;;  %v394_v21 = vmax.f32 %v777_v14, 0.0 }
  0xa6   : > { %425 = vst [vmem:[%s815_s26 + $0x50] sm:$0xff] %v377_v53  ;;  %426 = vst [vmem:[%s815_s26 + $0x58] sm:$0xff] %v378_v54  ;;  %v395_v11 = vmax.f32 %v780_v57, 0.0  ;;  %v396_v22 = vmax.f32 %v782_v58, 0.0  ;;  %v397_v27 = vmax.f32 %v784_v15, 0.0  ;;  %v398_v28 = vmax.f32 %v786_v5, 0.0 }
  0xa7   : > { %427 = vst [vmem:[%s815_s26 + $0x60] sm:$0xff] %v379_v55  ;;  %428 = vst [vmem:[%s815_s26 + $0x68] sm:$0xff] %v380_v56  ;;  %v399_v29 = vmax.f32 %v788_v17, 0.0  ;;  %v400_v34 = vmax.f32 %v790_v4, 0.0  ;;  %v401_v39 = vmax.f32 %v792_v18, 0.0  ;;  %v402_v40 = vmax.f32 %v794_v19, 0.0 }
  0xa8   : > { %429 = vst [vmem:[%s815_s26 + $0x70] sm:$0xff] %v381_v59  ;;  %430 = vst [vmem:[%s815_s26 + $0x78] sm:$0xff] %v382_v60  ;;  %v403_v45 = vmax.f32 %v796_v6, 0.0  ;;  %v404_v46 = vmax.f32 %v798_v20, 0.0  ;;  %v405_v12 = vmax.f32 %v800_v23, 0.0  ;;  %v406_v3 = vmax.f32 %v802_v24, 0.0 }
  0xa9   : > { %431 = vst [vmem:[%s815_s26 + $0x80] sm:$0xff] %v383_v61  ;;  %432 = vst [vmem:[%s815_s26 + $0x88] sm:$0xff] %v384_v62  ;;  %v407_v13 = vmax.f32 %v804_v25, 0.0  ;;  %v408_v47 = vmax.f32 %v806_v26, 0.0  ;;  %v409_v52 = vmax.f32 %v808_v30, 0.0  ;;  %v410_v14 = vmax.f32 %v810_v31, 0.0 }
  0xaa   : > { %433 = vst [vmem:[%s815_s26 + $0x90] sm:$0xff] %v385_v63  ;;  %434 = vst [vmem:[%s815_s26 + $0x98] sm:$0xff] %v386_v0  ;;  %v411_v57 = vmax.f32 %v817_v32, 0.0  ;;  %v412_v58 = vmax.f32 %v819_v33, 0.0  ;;  %v413_v15 = vmax.f32 %v821_v35, 0.0  ;;  %v414_v5 = vmax.f32 %v823_v36, 0.0 }
  0xab   : > { %435 = vst [vmem:[%s815_s26 + $0xa0] sm:$0xff] %v387_v1  ;;  %436 = vst [vmem:[%s815_s26 + $0xa8] sm:$0xff] %v388_v2 }
  0xac   : > { %437 = vst [vmem:[%s815_s26 + $0xb0] sm:$0xff] %v389_v7  ;;  %438 = vst [vmem:[%s815_s26 + $0xb8] sm:$0xff] %v390_v8 }
  0xad   : > { %439 = vst [vmem:[%s815_s26 + $0xc0] sm:$0xff] %v391_v9  ;;  %440 = vst [vmem:[%s815_s26 + $0xc8] sm:$0xff] %v392_v10 }
  0xae   : > { %441 = vst [vmem:[%s815_s26 + $0xd0] sm:$0xff] %v393_v16  ;;  %442 = vst [vmem:[%s815_s26 + $0xd8] sm:$0xff] %v394_v21 }
  0xaf   : > { %443 = vst [vmem:[%s815_s26 + $0xe0] sm:$0xff] %v395_v11  ;;  %444 = vst [vmem:[%s815_s26 + $0xe8] sm:$0xff] %v396_v22 }
  0xb0   : > { %445 = vst [vmem:[%s815_s26 + $0xf0] sm:$0xff] %v397_v27  ;;  %446 = vst [vmem:[%s815_s26 + $0xf8] sm:$0xff] %v398_v28 }
  0xb1   : > { %447 = vst [vmem:[%s815_s26 + $0x100] sm:$0xff] %v399_v29  ;;  %448 = vst [vmem:[%s815_s26 + $0x108] sm:$0xff] %v400_v34 }
  0xb2   : > { %449 = vst [vmem:[%s815_s26 + $0x110] sm:$0xff] %v401_v39  ;;  %450 = vst [vmem:[%s815_s26 + $0x118] sm:$0xff] %v402_v40 }
  0xb3   : > { %451 = vst [vmem:[%s815_s26 + $0x120] sm:$0xff] %v403_v45  ;;  %452 = vst [vmem:[%s815_s26 + $0x128] sm:$0xff] %v404_v46 }
  0xb4   : > { %453 = vst [vmem:[%s815_s26 + $0x130] sm:$0xff] %v405_v12  ;;  %454 = vst [vmem:[%s815_s26 + $0x138] sm:$0xff] %v406_v3 }
  0xb5   : > { %455 = vst [vmem:[%s815_s26 + $0x140] sm:$0xff] %v407_v13  ;;  %456 = vst [vmem:[%s815_s26 + $0x148] sm:$0xff] %v408_v47 }
  0xb6   : > { %457 = vst [vmem:[%s815_s26 + $0x150] sm:$0xff] %v409_v52  ;;  %458 = vst [vmem:[%s815_s26 + $0x158] sm:$0xff] %v410_v14 }
  0xb7   : > { %459 = vst [vmem:[%s815_s26 + $0x160] sm:$0xff] %v411_v57  ;;  %460 = vst [vmem:[%s815_s26 + $0x168] sm:$0xff] %v412_v58 }
  0xb8   : > { %461 = vst [vmem:[%s815_s26 + $0x170] sm:$0xff] %v413_v15  ;;  %462 = vst [vmem:[%s815_s26 + $0x178] sm:$0xff] %v414_v5 }
  0xb9 PF: > { %s13_s12 = sadd.s32 1, %s550_s12  }
  0xba   : > { %p10_p4 = scmp.ge.s32.totalorder %s13_s12, 4  }
  0xbc   :  { %12 = sbr.rel (!%p10_p4) target bundleno = 1 (0x1), region = 62 }

// kernel: conv3d_block.2
= control target key start
LH: loop header
LB: loop body
LE: loop exit
PB: predicated region body
PF: predicated region fallthrough
CT: control target
= control target key end

     0   :  { %s4173_s24 = smov 0   ;;  %s4175_s25 = smov 0   ;;  %s4875_s0 = inlined_call_operand.vmem [shape: bf16[2,18,8,512], index: 0, kind: input, shape index: {}, may-alias: {0,1,2}]   ;;  %s4876_s1 = inlined_call_operand.vmem [shape: bf16[2,18,8,512], index: 1, kind: input, shape index: {}, may-alias: {0,1,2}]   ;;  %s4877_s2 = inlined_call_operand.vmem [shape: bf16[2,18,8,512], index: 2, kind: input, shape index: {}, may-alias: {0,1,2}]   ;;  %s4878_s3 = inlined_call_operand.vmem [shape: bf16[27,8,8], index: 3, kind: input, shape index: {}]   ;;  %s4879_s4 = inlined_call_operand.vmem [shape: f32[8,1], index: 4, kind: input, shape index: {}]   ;;  %s4880_s5 = inlined_call_operand.vmem [shape: f32[1,384], index: 5, kind: input, shape index: {}]   ;;  %s4881_s6 = inlined_call_operand.vmem [shape: bf16[2,16,8,384], index: 6, kind: output, shape index: {0}]   ;;  %s4882_s7 = inlined_call_operand.vmem [shape: f32[2,16,8,2], index: 7, kind: output, shape index: {1}]  }
   0x1   :  { %s4177_s26 = smov 0   ;;  %s4179_s27 = smov 0  }
   0x2   :  { %s4181_s28 = smov 0  }
   0x3 LB: > { %s27_s29 = sadd.s32 1, %s4112_s26  ;;  %s30_s30 = sadd.s32 1, %s4116_s27  ;;  %s4120_s28 = sphi %s4181_s28, %s18_s28   ;;  %s4116_s27 = sphi %s4179_s27, %s4886_s27   ;;  %s4112_s26 = sphi %s4177_s26, %s4885_s26   ;;  %s4108_s25 = sphi %s4175_s25, %s4884_s25   ;;  %s4104_s24 = sphi %s4173_s24, %s4883_s24  }
   0x4   : > { %p28_p0 = scmp.ge.s32.totalorder %s27_s29, 16  ;;  %p3652_p1 = scmp.ge.s32.totalorder %s4120_s28, 1 }
   0x5   : > { %p302_p2 = scmp.lt.s32.totalorder %s4120_s28, 33 }
   0x6   : > { %s4888_s29 = smov (%p28_p0, %s27_s29), 0  ;;  %s4890_s30 = smov (!%p28_p0, %s30_s30), %s4116_s27 }
   0x7   : > { %p303_p3 = pnand %p3652_p1, %p302_p2  ;;  %p32_p4 = scmp.ge.s32.totalorder %s4890_s30, 2 }
   0x8   : > { %p370_p5 = scmp.lt.s32.totalorder (!%p303_p3), %s4108_s25, 1  ;;  %p372_p6 = scmp.lt.s32.totalorder (!%p303_p3), %s4104_s24, 17  ;;  %v4122_v0 = vmov (!%p303_p3), 0.0   ;;  %v4123_v1 = vmov (!%p303_p3), 0   ;;  %vm4124_vm0 = vmmov (!%p303_p3), 0   ;;  %vm444_vm1 = vcmask (!%p303_p3), 1039360  }
   0x9   : > { %s4892_s30 = smov (%p32_p4, %s4890_s30), 0  ;;  %306 = sbr.rel (%p303_p3) target bundleno = 879 (0x36f), region = 44 }
   0xa   : > { %3850 = vmatprep.subr.bf16.mxu1 (!%p303_p3), %v4122_v0  ;;  %494 = vmatprep.mubr.bf16.mxu0 (!%p303_p3), %v4123_v1  ;;  %s379_s16 = sadd.s32 (!%p303_p3), 1, %s4104_s24  ;;  %s4125_s17 = smov (!%p303_p3), 127   ;;  %vm452_vm2 = vcmask (!%p303_p3), 1043456   ;;  %v3662_v24 = vld [vmem:[%s4878_s3 + $0x4] sm:$0xf] (!%p303_p3)  ;;  %vm448_vm3 = vcmask (!%p303_p3), 64512  }
   0xb   : > { %3852 = vmatprep.mubr.msk.bf16.mxu1 (!%p303_p3), %vm4124_vm0, %v4122_v0  ;;  %4066 = vset.pattern.permute.xlu0 (!%p303_p3), %v4123_v1  ;;  %p382_p7 = scmp.lt.s32.totalorder (!%p303_p3), %s379_s16, 17  ;;  %s4127_s14 = smov (!%p303_p3), 110   ;;  %vm654_vm4 = vcmask (!%p303_p3), 1031168   ;;  %v421_v36 = vld [vmem:[%s4878_s3] sm:$0xf] (!%p303_p3)  ;;  %vm764_vm5 = vcmask (!%p303_p3), 900096  }
   0xc   : > { %s4130_s21 = smov (!%p303_p3), 92   ;;  %s4131_s22 = smov (!%p303_p3), 91   ;;  %v3676_v50 = vld [vmem:[%s4878_s3 + $0x8] sm:$0xf] (!%p303_p3)  ;;  %vm874_vm6 = vcmask (!%p303_p3), 891904   ;;  %vm984_vm7 = vcmask (!%p303_p3), 883712  }
   0xd   : > { %v3680_v60 = vld [vmem:[%s4878_s3 + $0xc] sm:$0xf] (!%p303_p3)  ;;  %vm1094_vm8 = vcmask (!%p303_p3), 752640   ;;  %vm1204_vm9 = vcmask (!%p303_p3), 744448   ;;  %vm1314_vm10 = vcmask (!%p303_p3), 736256   ;;  %p403_p9 = scmp.lt.s32.totalorder (!%p303_p3), %s4104_s24, 15 }
   0xe   : > { %vm3460_vm11 = vcmask (!%p303_p3), 7168   ;;  %vm3462_vm12 = vcmask (!%p303_p3), 15360  }
  0x10   : > { %s4894_s25 = smov (!%p370_p5, %s4108_s25), 1  ;;  %s4896_s16 = smov (!%p382_p7, %s379_s16), 17 }
  0x11   : > { %s373_s8 = scalar_select %p372_p6, %s4104_s24, 17 }
  0x12   : > { %s4211_s9 = smul.u32 72, %s4894_s25  ;;  %s3655_s18 = sshll.u32 %s4896_s16, 2 }
  0x13   : > { %s3653_s10 = sshll.u32 %s373_s8, 2  ;;  %s4126_s8 = smov 126  }
  0x14   : > { %s376_s11 = sadd.s32 %s4211_s9, %s3653_s10  ;;  %s386_s19 = sadd.s32 %s4211_s9, %s3655_s18 }
  0x15   : > { %s3654_s12 = sshll.u32 %s376_s11, 2  ;;  %s3656_s20 = sshll.u32 %s386_s19, 2 }
  0x16   : > { %s4221_s15 = scalar_lea.vmem %s4875_s0, %s3654_s12  ;;  %s4240_s23 = scalar_lea.vmem %s4876_s1, %s3656_s20 }
  0x17   : > { %v423_v2 = vld [vmem:[%s4221_s15 + $0x8] sm:$0xff]  ;;  %v422_v3 = vld [vmem:[%s4221_s15] sm:$0xff]  ;;  %s390_s10 = sadd.s32 2, %s4104_s24  ;;  %s4128_s20 = smov 109  }
  0x18   : > { %v3665_v4 = vcombine.low %v423_v2, %v423_v2  ;;  %v4226_v5 = vcombine.low %v422_v3, %v422_v3  ;;  %v3666_v6 = vcombine.high %v423_v2, %v423_v2  ;;  %v4231_v7 = vcombine.high %v422_v3, %v422_v3  ;;  %p393_p8 = scmp.lt.s32.totalorder %s390_s10, 17  ;;  %v1522_v8 = vld [vmem:[%s4240_s23] sm:$0xff]  ;;  %v1523_v11 = vld [vmem:[%s4240_s23 + $0x8] sm:$0xff]  ;;  %s4900_s24 = smov (!%p403_p9, %s4104_s24), 15 }
  0x19   : > { %v4292_v9 = vcombine.low %v1522_v8, %v1522_v8  ;;  %v4294_v10 = vcombine.high %v1522_v8, %v1522_v8  ;;  %v4301_v12 = vcombine.low %v1523_v11, %v1523_v11  ;;  %v4303_v13 = vcombine.high %v1523_v11, %v1523_v11  ;;  %v4075_v18 = vld [vmem:[%s4221_s15 + $0x8] ss:$0 sps:$4 sm:$0xff]   ;;  %v3684_v8 = vld [vmem:[%s4878_s3 + $0x10] sm:$0xf] }
  0x1a   : > { %440 = vrot.lane.b32.xlu1 %v3665_v4, %s4125_s17  ;;  %436 = vrot.lane.b32.xlu0 %v4226_v5, %s4125_s17  ;;  %s4898_s10 = smov (!%p393_p8, %s390_s10), 17  ;;  %v555_v26 = vsel %vm452_vm2, %v4226_v5, 0  ;;  %v561_v28 = vsel %vm452_vm2, %v4075_v18, 0 }
  0x1b   : > { %s3657_s11 = sshll.u32 %s4898_s10, 2  ;;  %s4132_s10 = smov 90  }
  0x1c   : > { %s397_s12 = sadd.s32 %s4211_s9, %s3657_s11  ;;  %s4129_s9 = smov 108  }
  0x1d   : > { %s3658_s13 = sshll.u32 %s397_s12, 2 }
  0x1e   : > { %442 = vrot.lane.b32.xlu1 %v3666_v6, %s4125_s17  ;;  %438 = vrot.lane.b32.xlu0 %v4231_v7, %s4125_s17  ;;  %s4257_s19 = scalar_lea.vmem %s4877_s2, %s3658_s13 }
  0x1f   : > { %v2514_v29 = vld [vmem:[%s4257_s19] sm:$0xff]  ;;  %v2515_v37 = vld [vmem:[%s4257_s19 + $0x8] sm:$0xff] }
  0x20   : > { %v4383_v32 = vcombine.low %v2514_v29, %v2514_v29  ;;  %v4402_v42 = vcombine.high %v2514_v29, %v2514_v29  ;;  %v4406_v43 = vcombine.low %v2515_v37, %v2515_v37  ;;  %v4411_v46 = vcombine.high %v2515_v37, %v2515_v37 }
  0x22   : > { %646 = vrot.lane.b32.xlu0 %v4226_v5, %s4126_s8  ;;  %648 = vrot.lane.b32.xlu1 %v4231_v7, %s4126_s8 }
  0x26   : > { %650 = vrot.lane.b32.xlu0 %v3665_v4, %s4126_s8  ;;  %652 = vrot.lane.b32.xlu1 %v3666_v6, %s4126_s8 }
  0x2a   : > { %756 = vrot.lane.b32.xlu0 %v4226_v5, %s4127_s14  ;;  %758 = vrot.lane.b32.xlu1 %v4231_v7, %s4127_s14 }
  0x2e   : > { %760 = vrot.lane.b32.xlu0 %v3665_v4, %s4127_s14  ;;  %762 = vrot.lane.b32.xlu1 %v3666_v6, %s4127_s14 }
  0x32   : > { %866 = vrot.lane.b32.xlu0 %v4226_v5, %s4128_s20  ;;  %868 = vrot.lane.b32.xlu1 %v4231_v7, %s4128_s20 }
  0x36   : > { %870 = vrot.lane.b32.xlu0 %v3665_v4, %s4128_s20  ;;  %872 = vrot.lane.b32.xlu1 %v3666_v6, %s4128_s20 }
  0x3a   : > { %976 = vrot.lane.b32.xlu0 %v4226_v5, %s4129_s9  ;;  %978 = vrot.lane.b32.xlu1 %v4231_v7, %s4129_s9 }
  0x3e   : > { %980 = vrot.lane.b32.xlu0 %v3665_v4, %s4129_s9  ;;  %982 = vrot.lane.b32.xlu1 %v3666_v6, %s4129_s9 }
  0x42   : > { %1086 = vrot.lane.b32.xlu0 %v4226_v5, %s4130_s21  ;;  %1088 = vrot.lane.b32.xlu1 %v4231_v7, %s4130_s21 }
  0x46   : > { %1090 = vrot.lane.b32.xlu0 %v3665_v4, %s4130_s21  ;;  %1092 = vrot.lane.b32.xlu1 %v3666_v6, %s4130_s21 }
  0x4a   : > { %1196 = vrot.lane.b32.xlu0 %v4226_v5, %s4131_s22  ;;  %1198 = vrot.lane.b32.xlu1 %v4231_v7, %s4131_s22 }
  0x4e   : > { %1200 = vrot.lane.b32.xlu0 %v3665_v4, %s4131_s22  ;;  %1202 = vrot.lane.b32.xlu1 %v3666_v6, %s4131_s22 }
  0x52   : > { %1306 = vrot.lane.b32.xlu0 %v4226_v5, %s4132_s10  ;;  %1308 = vrot.lane.b32.xlu1 %v4231_v7, %s4132_s10 }
  0x56   : > { %1310 = vrot.lane.b32.xlu0 %v3665_v4, %s4132_s10  ;;  %1312 = vrot.lane.b32.xlu1 %v3666_v6, %s4132_s10 }
  0x5a   : > { %1536 = vrot.lane.b32.xlu0 %v4292_v9, %s4125_s17  ;;  %1538 = vrot.lane.b32.xlu1 %v4294_v10, %s4125_s17 }
  0x5e   : > { %1540 = vrot.lane.b32.xlu0 %v4301_v12, %s4125_s17  ;;  %1542 = vrot.lane.b32.xlu1 %v4303_v13, %s4125_s17 }
  0x62   : > { %1645 = vrot.lane.b32.xlu0 %v4292_v9, %s4126_s8  ;;  %1647 = vrot.lane.b32.xlu1 %v4294_v10, %s4126_s8 }
  0x66   : > { %1649 = vrot.lane.b32.xlu0 %v4301_v12, %s4126_s8  ;;  %1651 = vrot.lane.b32.xlu1 %v4303_v13, %s4126_s8 }
  0x6a   : > { %1754 = vrot.lane.b32.xlu0 %v4292_v9, %s4127_s14  ;;  %1756 = vrot.lane.b32.xlu1 %v4294_v10, %s4127_s14 }
  0x6e   : > { %1758 = vrot.lane.b32.xlu0 %v4301_v12, %s4127_s14  ;;  %1760 = vrot.lane.b32.xlu1 %v4303_v13, %s4127_s14 }
  0x72   : > { %1863 = vrot.lane.b32.xlu0 %v4292_v9, %s4128_s20  ;;  %1865 = vrot.lane.b32.xlu1 %v4294_v10, %s4128_s20 }
  0x76   : > { %1867 = vrot.lane.b32.xlu0 %v4301_v12, %s4128_s20  ;;  %1869 = vrot.lane.b32.xlu1 %v4303_v13, %s4128_s20 }
  0x7a   : > { %1972 = vrot.lane.b32.xlu0 %v4292_v9, %s4129_s9  ;;  %1974 = vrot.lane.b32.xlu1 %v4294_v10, %s4129_s9 }
  0x7e   : > { %1976 = vrot.lane.b32.xlu0 %v4301_v12, %s4129_s9  ;;  %1978 = vrot.lane.b32.xlu1 %v4303_v13, %s4129_s9 }
  0x82   : > { %2081 = vrot.lane.b32.xlu0 %v4292_v9, %s4130_s21  ;;  %2083 = vrot.lane.b32.xlu1 %v4294_v10, %s4130_s21 }
  0x86   : > { %2085 = vrot.lane.b32.xlu0 %v4301_v12, %s4130_s21  ;;  %2087 = vrot.lane.b32.xlu1 %v4303_v13, %s4130_s21 }
  0x8a   : > { %2190 = vrot.lane.b32.xlu0 %v4292_v9, %s4131_s22  ;;  %2192 = vrot.lane.b32.xlu1 %v4294_v10, %s4131_s22 }
  0x8c   : > { %v441_v14 = vpop.permute.xlu1 %440  ;;  %v437_v15 = vpop.permute.xlu0 %436 }
  0x8e   : > { %2194 = vrot.lane.b32.xlu0 %v4301_v12, %s4131_s22  ;;  %2196 = vrot.lane.b32.xlu1 %v4303_v13, %s4131_s22 }
  0x90   : > { %v443_v16 = vpop.permute.xlu1 %442  ;;  %v439_v17 = vpop.permute.xlu0 %438 }
  0x91   : > { %v446_v19 = vsel %vm444_vm1, %v439_v17, %v441_v14  ;;  %v445_v20 = vsel %vm444_vm1, %v437_v15, %v439_v17  ;;  %v447_v21 = vsel %vm444_vm1, %v441_v14, %v443_v16 }
  0x92   : > { %3667 = vmatprep.subr.msk.bf16.mxu0 %vm452_vm2, %v446_v19  ;;  %v454_v22 = vsel %vm452_vm2, %v445_v20, 0  ;;  %v460_v23 = vsel %vm452_vm2, %v447_v21, 0  ;;  %2299 = vrot.lane.b32.xlu0 %v4292_v9, %s4132_s10  ;;  %v3688_v20 = vld [vmem:[%s4878_s3 + $0x14] sm:$0xf] }
  0x93   : > { %463 = vmatpush1.bf16.msra.mxu0 %v454_v22  ;;  %3851 = vmatpush3.bf16.msra.mxu1 %v460_v23 }
  0x94   : > { %3673 = vmatprep.subr.msk.bf16.mxu0 %vm452_vm2, %v4231_v7  ;;  %v647_v25 = vpop.permute.xlu0 %646  ;;  %v649_v27 = vpop.permute.xlu1 %648  ;;  %3856 = vmatprep.subr.bf16.mxu1 %v4122_v0 }
  0x95   : > { %2301 = vrot.lane.b32.xlu1 %v4294_v10, %s4132_s10  ;;  %v655_v33 = vsel %vm654_vm4, %v647_v25, %v649_v27 }
  0x96   : > { %3853 = vmatmul.mubr.msk.bf16.vlgmr.msra.gmra.mrb[0].mxu1 %vm448_vm3, %v3662_v24  ;;  %3668 = vmatmul.mubr.msk.bf16.vlgmr.msra.gmra.mrb[0].mxu0 %vm448_vm3, %v3662_v24  ;;  %v662_v38 = vsel %vm452_vm2, %v655_v33, 0 }
  0x97   : > { %564 = vmatpush1.bf16.msra.mxu0 %v555_v26  ;;  %3857 = vmatpush3.bf16.msra.mxu1 %v561_v28 }
  0x98   : > { %v651_v30 = vpop.permute.xlu0 %650  ;;  %v653_v31 = vpop.permute.xlu1 %652  ;;  %3858 = vmatprep.mubr.msk.bf16.mxu1 %vm4124_vm0, %v4122_v0  ;;  %595 = vmatprep.mubr.bf16.mxu0 %v4123_v1 }
  0x99   : > { %v656_v34 = vsel %vm654_vm4, %v649_v27, %v651_v30  ;;  %v657_v35 = vsel %vm654_vm4, %v651_v30, %v653_v31  ;;  %3862 = vmatprep.subr.bf16.mxu1 %v4122_v0  ;;  %2303 = vrot.lane.b32.xlu0 %v4301_v12, %s4132_s10  ;;  %v3692_v30 = vld [vmem:[%s4878_s3 + $0x18] sm:$0xf] }
  0x9a   : > { %3677 = vmatprep.subr.msk.bf16.mxu0 %vm452_vm2, %v656_v34  ;;  %2305 = vrot.lane.b32.xlu1 %v4303_v13, %s4132_s10  ;;  %v668_v39 = vsel %vm452_vm2, %v657_v35, 0 }
  0x9c   : > { %v757_v40 = vpop.permute.xlu0 %756  ;;  %v759_v41 = vpop.permute.xlu1 %758 }
  0x9d   : > { %2528 = vrot.lane.b32.xlu0 %v4383_v32, %s4125_s17  ;;  %v765_v47 = vsel %vm764_vm5, %v757_v40, %v759_v41 }
  0x9e   : > { %3674 = vmatmul.mubr.msk.bf16.vlgmr.msra.gmra.mrb[4].mxu0 %vm448_vm3, %v421_v36  ;;  %3859 = vmatmul.mubr.msk.bf16.vlgmr.msra.gmra.mrb[4].mxu1 %vm448_vm3, %v421_v36  ;;  %v772_v51 = vsel %vm452_vm2, %v765_v47, 0 }
  0x9f   : > { %671 = vmatpush1.bf16.msra.mxu0 %v662_v38  ;;  %3863 = vmatpush3.bf16.msra.mxu1 %v668_v39 }
  0xa0   : > { %v761_v44 = vpop.permute.xlu0 %760  ;;  %v763_v45 = vpop.permute.xlu1 %762  ;;  %702 = vmatprep.mubr.bf16.mxu0 %v4123_v1  ;;  %3864 = vmatprep.mubr.msk.bf16.mxu1 %vm4124_vm0, %v4122_v0 }
  0xa1   : > { %v766_v48 = vsel %vm764_vm5, %v759_v41, %v761_v44  ;;  %v767_v49 = vsel %vm764_vm5, %v761_v44, %v763_v45  ;;  %3868 = vmatprep.subr.bf16.mxu1 %v4122_v0  ;;  %2530 = vrot.lane.b32.xlu1 %v4402_v42, %s4125_s17  ;;  %v3696_v41 = vld [vmem:[%s4878_s3 + $0x1c] sm:$0xf] }
  0xa2   : > { %3681 = vmatprep.subr.msk.bf16.mxu0 %vm452_vm2, %v766_v48  ;;  %2532 = vrot.lane.b32.xlu0 %v4406_v43, %s4125_s17  ;;  %v778_v52 = vsel %vm452_vm2, %v767_v49, 0  ;;  %v4080_v49 = vld [vmem:[%s4240_s23 + $0x8] ss:$0 sps:$4 sm:$0xff]   ;;  %s3660_s23 = sshll.u32 %s4894_s25, 4 }
  0xa4   : > { %v867_v53 = vpop.permute.xlu0 %866  ;;  %v869_v54 = vpop.permute.xlu1 %868 }
  0xa5   : > { %2534 = vrot.lane.b32.xlu1 %v4411_v46, %s4125_s17  ;;  %v875_v57 = vsel %vm874_vm6, %v867_v53, %v869_v54  ;;  %v1430_v53 = vsel %vm452_vm2, %v4292_v9, 0 }
  0xa6   : > { %3678 = vmatmul.mubr.msk.bf16.vlgmr.msra.gmra.mrb[8].mxu0 %vm448_vm3, %v3676_v50  ;;  %3865 = vmatmul.mubr.msk.bf16.vlgmr.msra.gmra.mrb[8].mxu1 %vm448_vm3, %v3676_v50  ;;  %v882_v61 = vsel %vm452_vm2, %v875_v57, 0 }
  0xa7   : > { %781 = vmatpush1.bf16.msra.mxu0 %v772_v51  ;;  %3869 = vmatpush3.bf16.msra.mxu1 %v778_v52  ;;  %v3700_v52 = vld [vmem:[%s4878_s3 + $0x20] sm:$0xf] }
  0xa8   : > { %v871_v55 = vpop.permute.xlu0 %870  ;;  %v873_v56 = vpop.permute.xlu1 %872  ;;  %812 = vmatprep.mubr.bf16.mxu0 %v4123_v1  ;;  %3870 = vmatprep.mubr.msk.bf16.mxu1 %vm4124_vm0, %v4122_v0 }
  0xa9   : > { %v876_v58 = vsel %vm874_vm6, %v869_v54, %v871_v55  ;;  %v877_v59 = vsel %vm874_vm6, %v871_v55, %v873_v56  ;;  %3874 = vmatprep.subr.bf16.mxu1 %v4122_v0  ;;  %2637 = vrot.lane.b32.xlu0 %v4383_v32, %s4126_s8  ;;  %v1436_v54 = vsel %vm452_vm2, %v4080_v49, 0 }
  0xaa   : > { %3685 = vmatprep.subr.msk.bf16.mxu0 %vm452_vm2, %v876_v58  ;;  %2639 = vrot.lane.b32.xlu1 %v4402_v42, %s4126_s8  ;;  %v888_v62 = vsel %vm452_vm2, %v877_v59, 0 }
  0xac   : > { %v977_v63 = vpop.permute.xlu0 %976  ;;  %v979_v2 = vpop.permute.xlu1 %978 }
  0xad   : > { %2641 = vrot.lane.b32.xlu0 %v4406_v43, %s4126_s8  ;;  %v985_v5 = vsel %vm984_vm7, %v977_v63, %v979_v2 }
  0xae   : > { %3682 = vmatmul.mubr.msk.bf16.vlgmr.msra.gmra.mrb[12].mxu0 %vm448_vm3, %v3680_v60  ;;  %3871 = vmatmul.mubr.msk.bf16.vlgmr.msra.gmra.mrb[12].mxu1 %vm448_vm3, %v3680_v60  ;;  %v992_v11 = vsel %vm452_vm2, %v985_v5, 0  ;;  %v3704_v60 = vld [vmem:[%s4878_s3 + $0x24] sm:$0xf] }
  0xaf   : > { %891 = vmatpush1.bf16.msra.mxu0 %v882_v61  ;;  %3875 = vmatpush3.bf16.msra.mxu1 %v888_v62 }
  0xb0   : > { %v981_v3 = vpop.permute.xlu0 %980  ;;  %v983_v4 = vpop.permute.xlu1 %982  ;;  %922 = vmatprep.mubr.bf16.mxu0 %v4123_v1  ;;  %3876 = vmatprep.mubr.msk.bf16.mxu1 %vm4124_vm0, %v4122_v0 }
  0xb1   : > { %v986_v6 = vsel %vm984_vm7, %v979_v2, %v981_v3  ;;  %v987_v7 = vsel %vm984_vm7, %v981_v3, %v983_v4  ;;  %3880 = vmatprep.subr.bf16.mxu1 %v4122_v0  ;;  %2643 = vrot.lane.b32.xlu1 %v4411_v46, %s4126_s8  ;;  %s4014_s8 = smul.u32 48, %s4894_s25 }
  0xb2   : > { %3689 = vmatprep.subr.msk.bf16.mxu0 %vm452_vm2, %v986_v6  ;;  %2746 = vrot.lane.b32.xlu0 %v4383_v32, %s4127_s14  ;;  %v998_v12 = vsel %vm452_vm2, %v987_v7, 0 }
  0xb4   : > { %v1087_v13 = vpop.permute.xlu0 %1086  ;;  %v1089_v14 = vpop.permute.xlu1 %1088 }
  0xb5   : > { %2748 = vrot.lane.b32.xlu1 %v4402_v42, %s4127_s14  ;;  %v1095_v17 = vsel %vm1094_vm8, %v1087_v13, %v1089_v14 }
  0xb6   : > { %3686 = vmatmul.mubr.msk.bf16.vlgmr.msra.gmra.mrb[16].mxu0 %vm448_vm3, %v3684_v8  ;;  %3877 = vmatmul.mubr.msk.bf16.vlgmr.msra.gmra.mrb[16].mxu1 %vm448_vm3, %v3684_v8  ;;  %v1102_v21 = vsel %vm452_vm2, %v1095_v17, 0  ;;  %v3711_v8 = vld [vmem:[%s4878_s3 + $0x28] sm:$0xf] }
  0xb7   : > { %1001 = vmatpush1.bf16.msra.mxu0 %v992_v11  ;;  %3881 = vmatpush3.bf16.msra.mxu1 %v998_v12 }
  0xb8   : > { %v1091_v15 = vpop.permute.xlu0 %1090  ;;  %v1093_v16 = vpop.permute.xlu1 %1092  ;;  %1032 = vmatprep.mubr.bf16.mxu0 %v4123_v1  ;;  %3882 = vmatprep.mubr.msk.bf16.mxu1 %vm4124_vm0, %v4122_v0 }
  0xb9   : > { %v1096_v18 = vsel %vm1094_vm8, %v1089_v14, %v1091_v15  ;;  %v1097_v19 = vsel %vm1094_vm8, %v1091_v15, %v1093_v16  ;;  %3886 = vmatprep.subr.bf16.mxu1 %v4122_v0  ;;  %2750 = vrot.lane.b32.xlu0 %v4406_v43, %s4127_s14 }
  0xba   : > { %3693 = vmatprep.subr.msk.bf16.mxu0 %vm452_vm2, %v1096_v18  ;;  %2752 = vrot.lane.b32.xlu1 %v4411_v46, %s4127_s14  ;;  %v1108_v22 = vsel %vm452_vm2, %v1097_v19, 0  ;;  %v3719_v19 = vld [vmem:[%s4878_s3 + $0x2c] sm:$0xf] }
  0xbc   : > { %v1197_v23 = vpop.permute.xlu0 %1196  ;;  %v1199_v24 = vpop.permute.xlu1 %1198 }
  0xbd   : > { %2855 = vrot.lane.b32.xlu0 %v4383_v32, %s4128_s20  ;;  %v1205_v27 = vsel %vm1204_vm9, %v1197_v23, %v1199_v24 }
  0xbe   : > { %3690 = vmatmul.mubr.msk.bf16.vlgmr.msra.gmra.mrb[20].mxu0 %vm448_vm3, %v3688_v20  ;;  %3883 = vmatmul.mubr.msk.bf16.vlgmr.msra.gmra.mrb[20].mxu1 %vm448_vm3, %v3688_v20  ;;  %v1212_v31 = vsel %vm452_vm2, %v1205_v27, 0 }
  0xbf   : > { %1111 = vmatpush1.bf16.msra.mxu0 %v1102_v21  ;;  %3887 = vmatpush3.bf16.msra.mxu1 %v1108_v22 }
  0xc0   : > { %v1201_v25 = vpop.permute.xlu0 %1200  ;;  %v1203_v26 = vpop.permute.xlu1 %1202  ;;  %1142 = vmatprep.mubr.bf16.mxu0 %v4123_v1  ;;  %3888 = vmatprep.mubr.msk.bf16.mxu1 %vm4124_vm0, %v4122_v0 }
  0xc1   : > { %v1206_v28 = vsel %vm1204_vm9, %v1199_v24, %v1201_v25  ;;  %v1207_v29 = vsel %vm1204_vm9, %v1201_v25, %v1203_v26  ;;  %2857 = vrot.lane.b32.xlu1 %v4402_v42, %s4128_s20  ;;  %3892 = vmatprep.subr.bf16.mxu1 %v4122_v0 }
  0xc2   : > { %3697 = vmatprep.subr.msk.bf16.mxu0 %vm452_vm2, %v1206_v28  ;;  %2859 = vrot.lane.b32.xlu0 %v4406_v43, %s4128_s20  ;;  %v1218_v33 = vsel %vm452_vm2, %v1207_v29, 0  ;;  %v3723_v28 = vld [vmem:[%s4878_s3 + $0x30] sm:$0xf] }
  0xc4   : > { %v1307_v34 = vpop.permute.xlu0 %1306  ;;  %v1309_v35 = vpop.permute.xlu1 %1308 }
  0xc5   : > { %2861 = vrot.lane.b32.xlu1 %v4411_v46, %s4128_s20  ;;  %v1315_v38 = vsel %vm1314_vm10, %v1307_v34, %v1309_v35 }
  0xc6   : > { %3694 = vmatmul.mubr.msk.bf16.vlgmr.msra.gmra.mrb[24].mxu0 %vm448_vm3, %v3692_v30  ;;  %3889 = vmatmul.mubr.msk.bf16.vlgmr.msra.gmra.mrb[24].mxu1 %vm448_vm3, %v3692_v30  ;;  %v1322_v44 = vsel %vm452_vm2, %v1315_v38, 0 }
  0xc7   : > { %1221 = vmatpush1.bf16.msra.mxu0 %v1212_v31  ;;  %3893 = vmatpush3.bf16.msra.mxu1 %v1218_v33 }
  0xc8   : > { %v1311_v36 = vpop.permute.xlu0 %1310  ;;  %v1313_v37 = vpop.permute.xlu1 %1312  ;;  %2964 = vrot.lane.b32.xlu0 %v4383_v32, %s4129_s9  ;;  %1252 = vmatprep.mubr.bf16.mxu0 %v4123_v1 }
  0xc9   : > { %v1316_v39 = vsel %vm1314_vm10, %v1309_v35, %v1311_v36  ;;  %v1317_v40 = vsel %vm1314_vm10, %v1311_v36, %v1313_v37  ;;  %3894 = vmatprep.mubr.msk.bf16.mxu1 %vm4124_vm0, %v4122_v0  ;;  %2966 = vrot.lane.b32.xlu1 %v4402_v42, %s4129_s9 }
  0xca   : > { %3701 = vmatprep.subr.msk.bf16.mxu0 %vm452_vm2, %v1316_v39  ;;  %3898 = vmatprep.subr.bf16.mxu1 %v4122_v0  ;;  %v1328_v45 = vsel %vm452_vm2, %v1317_v40, 0  ;;  %v3727_v39 = vld [vmem:[%s4878_s3 + $0x34] sm:$0xf] }
  0xcc   : > { %2968 = vrot.lane.b32.xlu0 %v4406_v43, %s4129_s9  ;;  %v1537_v47 = vpop.permute.xlu0 %1536  ;;  %v1539_v48 = vpop.permute.xlu1 %1538 }
  0xcd   : > { %2970 = vrot.lane.b32.xlu1 %v4411_v46, %s4129_s9  ;;  %v1544_v58 = vsel %vm444_vm1, %v1537_v47, %v1539_v48 }
  0xce   : > { %3698 = vmatmul.mubr.msk.bf16.vlgmr.msra.gmra.mrb[28].mxu0 %vm448_vm3, %v3696_v41  ;;  %3895 = vmatmul.mubr.msk.bf16.vlgmr.msra.gmra.mrb[28].mxu1 %vm448_vm3, %v3696_v41  ;;  %v1551_v61 = vsel %vm452_vm2, %v1544_v58, 0  ;;  %v3735_v58 = vld [vmem:[%s4878_s3 + $0x3c] sm:$0xf] }
  0xcf   : > { %1331 = vmatpush1.bf16.msra.mxu0 %v1322_v44  ;;  %3899 = vmatpush3.bf16.msra.mxu1 %v1328_v45 }
  0xd0   : > { %3073 = vrot.lane.b32.xlu0 %v4383_v32, %s4130_s21  ;;  %1362 = vmatprep.mubr.bf16.mxu0 %v4123_v1  ;;  %v1541_v50 = vpop.permute.xlu0 %1540  ;;  %v1543_v51 = vpop.permute.xlu1 %1542 }
  0xd1   : > { %3900 = vmatprep.mubr.msk.bf16.mxu1 %vm4124_vm0, %v4122_v0  ;;  %3075 = vrot.lane.b32.xlu1 %v4402_v42, %s4130_s21  ;;  %v1546_v59 = vsel %vm444_vm1, %v1541_v50, %v1543_v51 }
  0xd2   : > { %3708 = vmatprep.subr.msk.bf16.mxu0 %vm452_vm2, %v4294_v10  ;;  %3904 = vmatprep.subr.bf16.mxu1 %v4122_v0  ;;  %v1545_v10 = vsel %vm444_vm1, %v1539_v48, %v1541_v50  ;;  %v1557_v62 = vsel %vm452_vm2, %v1546_v59, 0 }
  0xd4   : > { %3077 = vrot.lane.b32.xlu0 %v4406_v43, %s4130_s21  ;;  %v1646_v55 = vpop.permute.xlu0 %1645  ;;  %v1648_v56 = vpop.permute.xlu1 %1647 }
  0xd5   : > { %3079 = vrot.lane.b32.xlu1 %v4411_v46, %s4130_s21  ;;  %v1653_v6 = vsel %vm654_vm4, %v1646_v55, %v1648_v56  ;;  %s415_s21 = sadd.s32 %s3660_s23, %s4900_s24 }
  0xd6   : > { %3702 = vmatmul.mubr.msk.bf16.vlgmr.msra.gmra.mrb[32].mxu0 %vm448_vm3, %v3700_v52  ;;  %3901 = vmatmul.mubr.msk.bf16.vlgmr.msra.gmra.mrb[32].mxu1 %vm448_vm3, %v3700_v52  ;;  %v1660_v11 = vsel %vm452_vm2, %v1653_v6, 0  ;;  %v3731_v52 = vld [vmem:[%s4878_s3 + $0x38] sm:$0xf]  ;;  %s3661_s11 = sshll.u32 %s415_s21, 3 }
  0xd7   : > { %1439 = vmatpush1.bf16.msra.mxu0 %v1430_v53  ;;  %3905 = vmatpush3.bf16.msra.mxu1 %v1436_v54  ;;  %s417_s15 = scalar_lea.vmem %s4882_s7, %s3661_s11 }
  0xd8   : > { %3182 = vrot.lane.b32.xlu0 %v4383_v32, %s4131_s22  ;;  %1470 = vmatprep.mubr.bf16.mxu0 %v4123_v1  ;;  %v1650_v9 = vpop.permute.xlu0 %1649  ;;  %v1652_v57 = vpop.permute.xlu1 %1651 }
  0xd9   : > { %3906 = vmatprep.mubr.msk.bf16.mxu1 %vm4124_vm0, %v4122_v0  ;;  %3716 = vmatprep.subr.msk.bf16.mxu0 %vm452_vm2, %v1545_v10  ;;  %v1654_v3 = vsel %vm654_vm4, %v1648_v56, %v1650_v9  ;;  %v1655_v7 = vsel %vm654_vm4, %v1650_v9, %v1652_v57 }
  0xda   : > { %3184 = vrot.lane.b32.xlu1 %v4402_v42, %s4131_s22  ;;  %3910 = vmatprep.subr.bf16.mxu1 %v4122_v0  ;;  %v1666_v12 = vsel %vm452_vm2, %v1655_v7, 0 }
  0xdc   : > { %3186 = vrot.lane.b32.xlu0 %v4406_v43, %s4131_s22  ;;  %v1755_v63 = vpop.permute.xlu0 %1754  ;;  %v1757_v2 = vpop.permute.xlu1 %1756 }
  0xdd   : > { %v1762_v18 = vsel %vm764_vm5, %v1755_v63, %v1757_v2 }
  0xde   : > { %3709 = vmatmul.mubr.msk.bf16.vlgmr.msra.gmra.mrb[36].mxu0 %vm448_vm3, %v3704_v60  ;;  %3907 = vmatmul.mubr.msk.bf16.vlgmr.msra.gmra.mrb[36].mxu1 %vm448_vm3, %v3704_v60 }
  0xdf   : > { %1560 = vmatpush1.bf16.msra.mxu0 %v1551_v61  ;;  %3911 = vmatpush3.bf16.msra.mxu1 %v1557_v62 }
  0xe0   : > { %3188 = vrot.lane.b32.xlu1 %v4411_v46, %s4131_s22  ;;  %3291 = vrot.lane.b32.xlu0 %v4383_v32, %s4132_s10  ;;  %v1759_v4 = vpop.permute.xlu0 %1758  ;;  %v1761_v5 = vpop.permute.xlu1 %1760 }
  0xe1   : > { %1591 = vmatprep.mubr.bf16.mxu0 %v4123_v1  ;;  %3912 = vmatprep.mubr.msk.bf16.mxu1 %vm4124_vm0, %v4122_v0  ;;  %v1763_v15 = vsel %vm764_vm5, %v1757_v2, %v1759_v4 }
  0xe2   : > { %3720 = vmatprep.subr.msk.bf16.mxu0 %vm452_vm2, %v1654_v3  ;;  %3916 = vmatprep.subr.bf16.mxu1 %v4122_v0 }
  0xe4   : > { %3293 = vrot.lane.b32.xlu1 %v4402_v42, %s4132_s10  ;;  %3295 = vrot.lane.b32.xlu0 %v4406_v43, %s4132_s10  ;;  %v1864_v13 = vpop.permute.xlu0 %1863  ;;  %v1866_v14 = vpop.permute.xlu1 %1865  ;;  %v1764_v43 = vsel %vm764_vm5, %v1759_v4, %v1761_v5  ;;  %v3739_v5 = vld [vmem:[%s4878_s3 + $0x40] sm:$0xf] }
  0xe5   : > { %v1775_v20 = vsel %vm452_vm2, %v1764_v43, 0  ;;  %v1871_v26 = vsel %vm874_vm6, %v1864_v13, %v1866_v14  ;;  %v4081_v13 = vld [vmem:[%s4257_s19 + $0x8] ss:$0 sps:$4 sm:$0xff]  }
  0xe6   : > { %3717 = vmatmul.mubr.msk.bf16.vlgmr.msra.gmra.mrb[40].mxu0 %vm448_vm3, %v3711_v8  ;;  %3913 = vmatmul.mubr.msk.bf16.vlgmr.msra.gmra.mrb[40].mxu1 %vm448_vm3, %v3711_v8  ;;  %v1878_v29 = vsel %vm452_vm2, %v1871_v26, 0 }
  0xe7   : > { %1669 = vmatpush1.bf16.msra.mxu0 %v1660_v11  ;;  %3917 = vmatpush3.bf16.msra.mxu1 %v1666_v12 }
  0xe8   : > { %3297 = vrot.lane.b32.xlu1 %v4411_v46, %s4132_s10  ;;  %1700 = vmatprep.mubr.bf16.mxu0 %v4123_v1  ;;  %v1868_v16 = vpop.permute.xlu0 %1867  ;;  %v1870_v17 = vpop.permute.xlu1 %1869  ;;  %v1769_v46 = vsel %vm452_vm2, %v1762_v18, 0  ;;  %s4013_s10 = smul.u32 3, %s4900_s24 }
  0xe9   : > { %3918 = vmatprep.mubr.msk.bf16.mxu1 %vm4124_vm0, %v4122_v0  ;;  %3724 = vmatprep.subr.msk.bf16.mxu0 %vm452_vm2, %v1763_v15  ;;  %v1872_v23 = vsel %vm874_vm6, %v1866_v14, %v1868_v16  ;;  %v1873_v27 = vsel %vm874_vm6, %v1868_v16, %v1870_v17  ;;  %v3743_v14 = vld [vmem:[%s4878_s3 + $0x44] sm:$0xf]  ;;  %v2422_v16 = vsel %vm452_vm2, %v4383_v32, 0  ;;  %v2428_v17 = vsel %vm452_vm2, %v4081_v13, 0 }
  0xea   : > { %3922 = vmatprep.subr.bf16.mxu1 %v4122_v0  ;;  %v1884_v30 = vsel %vm452_vm2, %v1873_v27, 0  ;;  %s407_s16 = sadd.s32 %s4014_s8, %s4013_s10 }
  0xeb   : > { %s3659_s20 = sshll.u32 %s407_s16, 2 }
  0xec   : > { %v1973_v21 = vpop.permute.xlu0 %1972  ;;  %v1975_v22 = vpop.permute.xlu1 %1974  ;;  %s409_s17 = scalar_lea.vmem %s4881_s6, %s3659_s20 }
  0xed   : > { %v1980_v37 = vsel %vm984_vm7, %v1973_v21, %v1975_v22 }
  0xee   : > { %3721 = vmatmul.mubr.msk.bf16.vlgmr.msra.gmra.mrb[44].mxu0 %vm448_vm3, %v3719_v19  ;;  %3919 = vmatmul.mubr.msk.bf16.vlgmr.msra.gmra.mrb[44].mxu1 %vm448_vm3, %v3719_v19  ;;  %v1987_v40 = vsel %vm452_vm2, %v1980_v37, 0 }
  0xef   : > { %1778 = vmatpush1.bf16.msra.mxu0 %v1769_v46  ;;  %3923 = vmatpush3.bf16.msra.mxu1 %v1775_v20  ;;  %v3747_v46 = vld [vmem:[%s4878_s3 + $0x48] sm:$0xf] }
  0xf0   : > { %1809 = vmatprep.mubr.bf16.mxu0 %v4123_v1  ;;  %3924 = vmatprep.mubr.msk.bf16.mxu1 %vm4124_vm0, %v4122_v0  ;;  %v1977_v24 = vpop.permute.xlu0 %1976  ;;  %v1979_v25 = vpop.permute.xlu1 %1978 }
  0xf1   : > { %3728 = vmatprep.subr.msk.bf16.mxu0 %vm452_vm2, %v1872_v23  ;;  %3928 = vmatprep.subr.bf16.mxu1 %v4122_v0  ;;  %v1981_v34 = vsel %vm984_vm7, %v1975_v22, %v1977_v24  ;;  %v1982_v38 = vsel %vm984_vm7, %v1977_v24, %v1979_v25 }
  0xf2   : > { %v1993_v41 = vsel %vm452_vm2, %v1982_v38, 0  ;;  %v3762_v38 = vld [vmem:[%s4878_s3 + $0x50] sm:$0xf] }
  0xf4   : > { %v2082_v31 = vpop.permute.xlu0 %2081  ;;  %v2084_v33 = vpop.permute.xlu1 %2083 }
  0xf5   : > { %v2089_v49 = vsel %vm1094_vm8, %v2082_v31, %v2084_v33 }
  0xf6   : > { %3725 = vmatmul.mubr.msk.bf16.vlgmr.msra.gmra.mrb[48].mxu0 %vm448_vm3, %v3723_v28  ;;  %3925 = vmatmul.mubr.msk.bf16.vlgmr.msra.gmra.mrb[48].mxu1 %vm448_vm3, %v3723_v28  ;;  %v2096_v53 = vsel %vm452_vm2, %v2089_v49, 0  ;;  %v3754_v28 = vld [vmem:[%s4878_s3 + $0x4c] sm:$0xf] }
  0xf7   : > { %1887 = vmatpush1.bf16.msra.mxu0 %v1878_v29  ;;  %3929 = vmatpush3.bf16.msra.mxu1 %v1884_v30 }
  0xf8   : > { %1918 = vmatprep.mubr.bf16.mxu0 %v4123_v1  ;;  %3930 = vmatprep.mubr.msk.bf16.mxu1 %vm4124_vm0, %v4122_v0  ;;  %v2086_v35 = vpop.permute.xlu0 %2085  ;;  %v2088_v36 = vpop.permute.xlu1 %2087 }
  0xf9   : > { %3732 = vmatprep.subr.msk.bf16.mxu0 %vm452_vm2, %v1981_v34  ;;  %3934 = vmatprep.subr.bf16.mxu1 %v4122_v0  ;;  %v2090_v47 = vsel %vm1094_vm8, %v2084_v33, %v2086_v35  ;;  %v2091_v50 = vsel %vm1094_vm8, %v2086_v35, %v2088_v36 }
  0xfa   : > { %v2102_v54 = vsel %vm452_vm2, %v2091_v50, 0 }
  0xfc   : > { %v2191_v44 = vpop.permute.xlu0 %2190  ;;  %v2193_v45 = vpop.permute.xlu1 %2192 }
  0xfd   : > { %v2198_v9 = vsel %vm1204_vm9, %v2191_v44, %v2193_v45 }
  0xfe   : > { %3729 = vmatmul.mubr.msk.bf16.vlgmr.msra.gmra.mrb[52].mxu0 %vm448_vm3, %v3727_v39  ;;  %3931 = vmatmul.mubr.msk.bf16.vlgmr.msra.gmra.mrb[52].mxu1 %vm448_vm3, %v3727_v39  ;;  %v2205_v60 = vsel %vm452_vm2, %v2198_v9, 0 }
  0xff   : > { %1996 = vmatpush1.bf16.msra.mxu0 %v1987_v40  ;;  %3935 = vmatpush3.bf16.msra.mxu1 %v1993_v41 }
 0x100   : > { %2027 = vmatprep.mubr.bf16.mxu0 %v4123_v1  ;;  %3936 = vmatprep.mubr.msk.bf16.mxu1 %vm4124_vm0, %v4122_v0  ;;  %v2195_v48 = vpop.permute.xlu0 %2194  ;;  %v2197_v51 = vpop.permute.xlu1 %2196 }
 0x101   : > { %3736 = vmatprep.subr.msk.bf16.mxu0 %vm452_vm2, %v2090_v47  ;;  %3940 = vmatprep.subr.bf16.mxu1 %v4122_v0  ;;  %v2199_v56 = vsel %vm1204_vm9, %v2193_v45, %v2195_v48  ;;  %v2200_v57 = vsel %vm1204_vm9, %v2195_v48, %v2197_v51  ;;  %v3766_v51 = vld [vmem:[%s4878_s3 + $0x54] sm:$0xf] }
 0x102   : > { %v2211_v61 = vsel %vm452_vm2, %v2200_v57, 0 }
 0x104   : > { %v2300_v55 = vpop.permute.xlu0 %2299 }
 0x106   : > { %3733 = vmatmul.mubr.msk.bf16.vlgmr.msra.gmra.mrb[56].mxu0 %vm448_vm3, %v3731_v52  ;;  %3937 = vmatmul.mubr.msk.bf16.vlgmr.msra.gmra.mrb[56].mxu1 %vm448_vm3, %v3731_v52 }
 0x107   : > { %2105 = vmatpush1.bf16.msra.mxu0 %v2096_v53  ;;  %3941 = vmatpush3.bf16.msra.mxu1 %v2102_v54  ;;  %v2302_v10 = vpop.permute.xlu1 %2301  ;;  %v3398_v53 = vld [vmem:[%s4879_s4] sm:$0xff] }
 0x108   : > { %2136 = vmatprep.mubr.bf16.mxu0 %v4123_v1  ;;  %3942 = vmatprep.mubr.msk.bf16.mxu1 %vm4124_vm0, %v4122_v0  ;;  %v2307_v3 = vsel %vm1314_vm10, %v2300_v55, %v2302_v10 }
 0x109   : > { %3740 = vmatprep.subr.msk.bf16.mxu0 %vm452_vm2, %v2199_v56  ;;  %3946 = vmatprep.subr.bf16.mxu1 %v4122_v0  ;;  %v2314_v7 = vsel %vm452_vm2, %v2307_v3, 0 }
 0x10a   : > { %3401 = vperm.xlu0 %4066, %v3398_v53  }
 0x10b   : > { %v2304_v59 = vpop.permute.xlu0 %2303 }
 0x10c   : > { %v2308_v62 = vsel %vm1314_vm10, %v2302_v10, %v2304_v59  ;;  %v2306_v63 = vpop.permute.xlu1 %2305 }
 0x10d   : > { %v2309_v4 = vsel %vm1314_vm10, %v2304_v59, %v2306_v63 }
 0x10e   : > { %3737 = vmatmul.mubr.msk.bf16.vlgmr.msra.gmra.mrb[60].mxu0 %vm448_vm3, %v3735_v58  ;;  %3943 = vmatmul.mubr.msk.bf16.vlgmr.msra.gmra.mrb[60].mxu1 %vm448_vm3, %v3735_v58  ;;  %v2320_v8 = vsel %vm452_vm2, %v2309_v4, 0 }
 0x10f   : > { %2214 = vmatpush1.bf16.msra.mxu0 %v2205_v60  ;;  %3947 = vmatpush3.bf16.msra.mxu1 %v2211_v61  ;;  %v2529_v2 = vpop.permute.xlu0 %2528  ;;  %v3770_v60 = vld [vmem:[%s4878_s3 + $0x58] sm:$0xf] }
 0x110   : > { %2245 = vmatprep.mubr.bf16.mxu0 %v4123_v1  ;;  %3948 = vmatprep.mubr.msk.bf16.mxu1 %vm4124_vm0, %v4122_v0 }
 0x111   : > { %3744 = vmatprep.subr.msk.bf16.mxu0 %vm452_vm2, %v2308_v62  ;;  %3952 = vmatprep.subr.bf16.mxu1 %v4122_v0 }
 0x113   : > { %v2531_v6 = vpop.permute.xlu1 %2530 }
 0x114   : > { %v2533_v11 = vpop.permute.xlu0 %2532  ;;  %v2536_v19 = vsel %vm444_vm1, %v2529_v2, %v2531_v6 }
 0x115   : > { %v2537_v43 = vsel %vm444_vm1, %v2531_v6, %v2533_v11  ;;  %v2543_v21 = vsel %vm452_vm2, %v2536_v19, 0 }
 0x116   : > { %3741 = vmatmul.mubr.msk.bf16.vlgmr.msra.gmra.mrb[64].mxu0 %vm448_vm3, %v3739_v5  ;;  %3949 = vmatmul.mubr.msk.bf16.vlgmr.msra.gmra.mrb[64].mxu1 %vm448_vm3, %v3739_v5 }
 0x117   : > { %2323 = vmatpush1.bf16.msra.mxu0 %v2314_v7  ;;  %3953 = vmatpush3.bf16.msra.mxu1 %v2320_v8  ;;  %v2535_v12 = vpop.permute.xlu1 %2534  ;;  %v3774_v8 = vld [vmem:[%s4878_s3 + $0x5c] sm:$0xf] }
 0x118   : > { %2354 = vmatprep.mubr.bf16.mxu0 %v4123_v1  ;;  %3954 = vmatprep.mubr.msk.bf16.mxu1 %vm4124_vm0, %v4122_v0  ;;  %v2538_v32 = vsel %vm444_vm1, %v2533_v11, %v2535_v12 }
 0x119   : > { %3751 = vmatprep.subr.msk.bf16.mxu0 %vm452_vm2, %v4402_v42  ;;  %3958 = vmatprep.subr.bf16.mxu1 %v4122_v0  ;;  %v2549_v22 = vsel %vm452_vm2, %v2538_v32, 0 }
 0x11b   : > { %v2638_v15 = vpop.permute.xlu0 %2637 }
 0x11c   : > { %v2640_v18 = vpop.permute.xlu1 %2639 }
 0x11d   : > { %v2645_v26 = vsel %vm654_vm4, %v2638_v15, %v2640_v18 }
 0x11e   : > { %3745 = vmatmul.mubr.msk.bf16.vlgmr.msra.gmra.mrb[68].mxu0 %vm448_vm3, %v3743_v14  ;;  %3955 = vmatmul.mubr.msk.bf16.vlgmr.msra.gmra.mrb[68].mxu1 %vm448_vm3, %v3743_v14  ;;  %v2652_v30 = vsel %vm452_vm2, %v2645_v26, 0 }
 0x11f   : > { %2431 = vmatpush1.bf16.msra.mxu0 %v2422_v16  ;;  %3959 = vmatpush3.bf16.msra.mxu1 %v2428_v17  ;;  %v2642_v42 = vpop.permute.xlu0 %2641 }
 0x120   : > { %2462 = vmatprep.mubr.bf16.mxu0 %v4123_v1  ;;  %3960 = vmatprep.mubr.msk.bf16.mxu1 %vm4124_vm0, %v4122_v0  ;;  %v2646_v24 = vsel %vm654_vm4, %v2640_v18, %v2642_v42 }
 0x121   : > { %3759 = vmatprep.subr.msk.bf16.mxu0 %vm452_vm2, %v2537_v43  ;;  %3964 = vmatprep.subr.bf16.mxu1 %v4122_v0 }
 0x123   : > { %v2644_v20 = vpop.permute.xlu1 %2643 }
 0x124   : > { %v2747_v23 = vpop.permute.xlu0 %2746  ;;  %v2647_v27 = vsel %vm654_vm4, %v2642_v42, %v2644_v20  ;;  %v3778_v42 = vld [vmem:[%s4878_s3 + $0x60] sm:$0xf] }
 0x125   : > { %v2658_v31 = vsel %vm452_vm2, %v2647_v27, 0 }
 0x126   : > { %3752 = vmatmul.mubr.msk.bf16.vlgmr.msra.gmra.mrb[72].mxu0 %vm448_vm3, %v3747_v46  ;;  %3961 = vmatmul.mubr.msk.bf16.vlgmr.msra.gmra.mrb[72].mxu1 %vm448_vm3, %v3747_v46 }
 0x127   : > { %2552 = vmatpush1.bf16.msra.mxu0 %v2543_v21  ;;  %3965 = vmatpush3.bf16.msra.mxu1 %v2549_v22  ;;  %v2749_v25 = vpop.permute.xlu1 %2748 }
 0x128   : > { %2583 = vmatprep.mubr.bf16.mxu0 %v4123_v1  ;;  %3966 = vmatprep.mubr.msk.bf16.mxu1 %vm4124_vm0, %v4122_v0  ;;  %v2754_v36 = vsel %vm764_vm5, %v2747_v23, %v2749_v25 }
 0x129   : > { %3763 = vmatprep.subr.msk.bf16.mxu0 %vm452_vm2, %v2646_v24  ;;  %3970 = vmatprep.subr.bf16.mxu1 %v4122_v0  ;;  %v2761_v40 = vsel %vm452_vm2, %v2754_v36, 0 }
 0x12b   : > { %v2751_v29 = vpop.permute.xlu0 %2750 }
 0x12c   : > { %v2753_v33 = vpop.permute.xlu1 %2752  ;;  %v2755_v34 = vsel %vm764_vm5, %v2749_v25, %v2751_v29  ;;  %v3782_v25 = vld [vmem:[%s4878_s3 + $0x64] sm:$0xf] }
 0x12d   : > { %v2756_v37 = vsel %vm764_vm5, %v2751_v29, %v2753_v33 }
 0x12e   : > { %3760 = vmatmul.mubr.msk.bf16.vlgmr.msra.gmra.mrb[76].mxu0 %vm448_vm3, %v3754_v28  ;;  %3967 = vmatmul.mubr.msk.bf16.vlgmr.msra.gmra.mrb[76].mxu1 %vm448_vm3, %v3754_v28  ;;  %v2767_v41 = vsel %vm452_vm2, %v2756_v37, 0  ;;  %v3786_v28 = vld [vmem:[%s4878_s3 + $0x68] sm:$0xf] }
 0x12f   : > { %2661 = vmatpush1.bf16.msra.mxu0 %v2652_v30  ;;  %3971 = vmatpush3.bf16.msra.mxu1 %v2658_v31  ;;  %v2856_v35 = vpop.permute.xlu0 %2855 }
 0x130   : > { %2692 = vmatprep.mubr.bf16.mxu0 %v4123_v1  ;;  %3972 = vmatprep.mubr.msk.bf16.mxu1 %vm4124_vm0, %v4122_v0 }
 0x131   : > { %3767 = vmatprep.subr.msk.bf16.mxu0 %vm452_vm2, %v2755_v34  ;;  %3976 = vmatprep.subr.bf16.mxu1 %v4122_v0 }
 0x133   : > { %v2858_v39 = vpop.permute.xlu1 %2857 }
 0x134   : > { %v2860_v44 = vpop.permute.xlu0 %2859  ;;  %v2863_v48 = vsel %vm874_vm6, %v2856_v35, %v2858_v39 }
 0x135   : > { %v2864_v45 = vsel %vm874_vm6, %v2858_v39, %v2860_v44  ;;  %v2870_v54 = vsel %vm452_vm2, %v2863_v48, 0 }
 0x136   : > { %3764 = vmatmul.mubr.msk.bf16.vlgmr.msra.gmra.mrb[80].mxu0 %vm448_vm3, %v3762_v38  ;;  %3973 = vmatmul.mubr.msk.bf16.vlgmr.msra.gmra.mrb[80].mxu1 %vm448_vm3, %v3762_v38 }
 0x137   : > { %2770 = vmatpush1.bf16.msra.mxu0 %v2761_v40  ;;  %3977 = vmatpush3.bf16.msra.mxu1 %v2767_v41  ;;  %v2862_v47 = vpop.permute.xlu1 %2861 }
 0x138   : > { %2801 = vmatprep.mubr.bf16.mxu0 %v4123_v1  ;;  %3978 = vmatprep.mubr.msk.bf16.mxu1 %vm4124_vm0, %v4122_v0  ;;  %v2865_v49 = vsel %vm874_vm6, %v2860_v44, %v2862_v47 }
 0x139   : > { %3771 = vmatprep.subr.msk.bf16.mxu0 %vm452_vm2, %v2864_v45  ;;  %3982 = vmatprep.subr.bf16.mxu1 %v4122_v0  ;;  %v2876_v55 = vsel %vm452_vm2, %v2865_v49, 0 }
 0x13a   : > { %v2965_v50 = vpop.permute.xlu0 %2964 }
 0x13b   : > { %v2967_v52 = vpop.permute.xlu1 %2966 }
 0x13c   : > { %v2972_v57 = vsel %vm984_vm7, %v2965_v50, %v2967_v52 }
 0x13d   : > { %v2979_v62 = vsel %vm452_vm2, %v2972_v57, 0 }
 0x13e   : > { %3768 = vmatmul.mubr.msk.bf16.vlgmr.msra.gmra.mrb[84].mxu0 %vm448_vm3, %v3766_v51  ;;  %3979 = vmatmul.mubr.msk.bf16.vlgmr.msra.gmra.mrb[84].mxu1 %vm448_vm3, %v3766_v51  ;;  %v2969_v56 = vpop.permute.xlu0 %2968 }
 0x13f   : > { %2879 = vmatpush1.bf16.msra.mxu0 %v2870_v54  ;;  %3983 = vmatpush3.bf16.msra.mxu1 %v2876_v55  ;;  %v2973_v10 = vsel %vm984_vm7, %v2967_v52, %v2969_v56  ;;  %v2971_v9 = vpop.permute.xlu1 %2970 }
 0x140   : > { %2910 = vmatprep.mubr.bf16.mxu0 %v4123_v1  ;;  %3984 = vmatprep.mubr.msk.bf16.mxu1 %vm4124_vm0, %v4122_v0  ;;  %v2974_v58 = vsel %vm984_vm7, %v2969_v56, %v2971_v9 }
 0x141   : > { %3775 = vmatprep.subr.msk.bf16.mxu0 %vm452_vm2, %v2973_v10  ;;  %3988 = vmatprep.subr.bf16.mxu1 %v4122_v0  ;;  %v2985_v63 = vsel %vm452_vm2, %v2974_v58, 0 }
 0x142   : > { %v3074_v59 = vpop.permute.xlu0 %3073 }
 0x143   : > { %v3076_v61 = vpop.permute.xlu1 %3075 }
 0x144   : > { %v3081_v5 = vsel %vm1094_vm8, %v3074_v59, %v3076_v61 }
 0x145   : > { %v3088_v11 = vsel %vm452_vm2, %v3081_v5, 0 }
 0x146   : > { %3772 = vmatmul.mubr.msk.bf16.vlgmr.msra.gmra.mrb[88].mxu0 %vm448_vm3, %v3770_v60  ;;  %3985 = vmatmul.mubr.msk.bf16.vlgmr.msra.gmra.mrb[88].mxu1 %vm448_vm3, %v3770_v60  ;;  %v3078_v2 = vpop.permute.xlu0 %3077 }
 0x147   : > { %2988 = vmatpush1.bf16.msra.mxu0 %v2979_v62  ;;  %3989 = vmatpush3.bf16.msra.mxu1 %v2985_v63  ;;  %v3082_v3 = vsel %vm1094_vm8, %v3076_v61, %v3078_v2  ;;  %v3080_v4 = vpop.permute.xlu1 %3079 }
 0x148   : > { %3019 = vmatprep.mubr.bf16.mxu0 %v4123_v1  ;;  %3990 = vmatprep.mubr.msk.bf16.mxu1 %vm4124_vm0, %v4122_v0  ;;  %v3083_v6 = vsel %vm1094_vm8, %v3078_v2, %v3080_v4 }
 0x149   : > { %3779 = vmatprep.subr.msk.bf16.mxu0 %vm452_vm2, %v3082_v3  ;;  %3994 = vmatprep.subr.bf16.mxu1 %v4122_v0  ;;  %v3094_v12 = vsel %vm452_vm2, %v3083_v6, 0 }
 0x14a   : > { %v3183_v7 = vpop.permute.xlu0 %3182 }
 0x14c   : > { %v3185_v13 = vpop.permute.xlu1 %3184 }
 0x14d   : > { %v3190_v16 = vsel %vm1204_vm9, %v3183_v7, %v3185_v13 }
 0x14e   : > { %3776 = vmatmul.mubr.msk.bf16.vlgmr.msra.gmra.mrb[92].mxu0 %vm448_vm3, %v3774_v8  ;;  %3991 = vmatmul.mubr.msk.bf16.vlgmr.msra.gmra.mrb[92].mxu1 %vm448_vm3, %v3774_v8  ;;  %v3187_v14 = vpop.permute.xlu0 %3186  ;;  %v3197_v19 = vsel %vm452_vm2, %v3190_v16, 0 }
 0x14f   : > { %3097 = vmatpush1.bf16.msra.mxu0 %v3088_v11  ;;  %3995 = vmatpush3.bf16.msra.mxu1 %v3094_v12  ;;  %v3191_v15 = vsel %vm1204_vm9, %v3185_v13, %v3187_v14 }
 0x150   : > { %3128 = vmatprep.mubr.bf16.mxu0 %v4123_v1  ;;  %3996 = vmatprep.mubr.msk.bf16.mxu1 %vm4124_vm0, %v4122_v0 }
 0x151   : > { %3783 = vmatprep.subr.msk.bf16.mxu0 %vm452_vm2, %v3191_v15  ;;  %4000 = vmatprep.subr.bf16.mxu1 %v4122_v0 }
 0x152   : > { %v3189_v17 = vpop.permute.xlu1 %3188  ;;  %v3292_v18 = vpop.permute.xlu0 %3291 }
 0x153   : > { %v3192_v43 = vsel %vm1204_vm9, %v3187_v14, %v3189_v17 }
 0x154   : > { %v3203_v32 = vsel %vm452_vm2, %v3192_v43, 0 }
 0x156   : > { %3780 = vmatmul.mubr.msk.bf16.vlgmr.msra.gmra.mrb[96].mxu0 %vm448_vm3, %v3778_v42  ;;  %3997 = vmatmul.mubr.msk.bf16.vlgmr.msra.gmra.mrb[96].mxu1 %vm448_vm3, %v3778_v42  ;;  %v3294_v46 = vpop.permute.xlu1 %3293  ;;  %v3296_v20 = vpop.permute.xlu0 %3295 }
 0x157   : > { %3206 = vmatpush1.bf16.msra.mxu0 %v3197_v19  ;;  %4001 = vmatpush3.bf16.msra.mxu1 %v3203_v32  ;;  %v3300_v21 = vsel %vm1314_vm10, %v3294_v46, %v3296_v20  ;;  %v3299_v22 = vsel %vm1314_vm10, %v3292_v18, %v3294_v46 }
 0x158   : > { %3237 = vmatprep.mubr.bf16.mxu0 %v4123_v1  ;;  %4002 = vmatprep.mubr.msk.bf16.mxu1 %vm4124_vm0, %v4122_v0  ;;  %v3306_v26 = vsel %vm452_vm2, %v3299_v22, 0 }
 0x159   : > { %3787 = vmatprep.subr.msk.bf16.mxu0 %vm452_vm2, %v3300_v21  ;;  %4006 = vmatprep.subr.bf16.mxu1 %v4122_v0 }
 0x15a   : > { %v3298_v23 = vpop.permute.xlu1 %3297 }
 0x15b   : > { %v3301_v24 = vsel %vm1314_vm10, %v3296_v20, %v3298_v23 }
 0x15c   : > { %v3312_v27 = vsel %vm452_vm2, %v3301_v24, 0 }
 0x15e   : > { %3784 = vmatmul.mubr.msk.bf16.vlgmr.msra.gmra.mrb[100].mxu0 %vm448_vm3, %v3782_v25  ;;  %4003 = vmatmul.mubr.msk.bf16.vlgmr.msra.gmra.mrb[100].mxu1 %vm448_vm3, %v3782_v25 }
 0x15f   : > { %3315 = vmatpush1.bf16.msra.mxu0 %v3306_v26  ;;  %4007 = vmatpush3.bf16.msra.mxu1 %v3312_v27 }
 0x160   : > { %3346 = vmatprep.mubr.bf16.mxu0 %v4123_v1  ;;  %4008 = vmatprep.mubr.msk.bf16.mxu1 %vm4124_vm0, %v4122_v0 }
 0x166   : > { %3788 = vmatmul.mubr.msk.bf16.vlgmr.msra.gmra.mrb[104].mxu0 %vm448_vm3, %v3786_v28  ;;  %4009 = vmatmul.mubr.msk.bf16.vlgmr.msra.gmra.mrb[104].mxu1 %vm448_vm3, %v3786_v28 }
 0x169   : > { %v496_v29 = vpop.f32.mrb[0].mxu0  ;;  %v537_v30 = vpop.f32.mrb[0].mxu1 }
 0x16a   : > { %v498_v31 = vpop.f32.mrb[1].mxu0  ;;  %v3854_v33 = vpop.f32.mrb[1].mxu1 }
 0x16b   : > { %v500_v34 = vpop.f32.mrb[2].mxu0  ;;  %v540_v35 = vpop.f32.mrb[2].mxu1 }
 0x16c   : > { %v501_v36 = vpop.f32.mrb[3].mxu0  ;;  %v3855_v37 = vpop.f32.mrb[3].mxu1 }
 0x171   : > { %v597_v1 = vpop.f32.mrb[4].mxu0  ;;  %v638_v38 = vpop.f32.mrb[4].mxu1 }
 0x172   : > { %v598_v39 = vadd.f32 %v597_v1, %v496_v29  ;;  %v639_v0 = vadd.f32 %v638_v38, %v537_v30  ;;  %v599_v40 = vpop.f32.mrb[5].mxu0  ;;  %v3860_v41 = vpop.f32.mrb[5].mxu1 }
 0x173   : > { %v600_v44 = vadd.f32 %v599_v40, %v498_v31  ;;  %v601_v45 = vpop.f32.mrb[6].mxu0  ;;  %v641_v47 = vpop.f32.mrb[6].mxu1 }
 0x174   : > { %v602_v48 = vpop.f32.mrb[7].mxu0  ;;  %v3861_v49 = vpop.f32.mrb[7].mxu1 }
 0x179   : > { %v704_v50 = vpop.f32.mrb[8].mxu0  ;;  %v745_v51 = vpop.f32.mrb[8].mxu1 }
 0x17a   : > { %v751_v52 = vadd.f32 %v704_v50, %v598_v39  ;;  %v753_v53 = vadd.f32 %v745_v51, %v639_v0  ;;  %v706_v54 = vpop.f32.mrb[9].mxu0  ;;  %v3866_v55 = vpop.f32.mrb[9].mxu1 }
 0x17b   : > { %v752_v56 = vadd.f32 %v706_v54, %v600_v44  ;;  %v708_v10 = vpop.f32.mrb[10].mxu0  ;;  %v748_v9 = vpop.f32.mrb[10].mxu1 }
 0x17c   : > { %v709_v57 = vpop.f32.mrb[11].mxu0  ;;  %v3867_v58 = vpop.f32.mrb[11].mxu1 }
 0x181   : > { %v814_v59 = vpop.f32.mrb[12].mxu0  ;;  %v855_v60 = vpop.f32.mrb[12].mxu1 }
 0x182   : > { %v861_v61 = vadd.f32 %v814_v59, %v751_v52  ;;  %v863_v62 = vadd.f32 %v855_v60, %v753_v53  ;;  %v816_v63 = vpop.f32.mrb[13].mxu0  ;;  %v3872_v2 = vpop.f32.mrb[13].mxu1 }
 0x183   : > { %v862_v3 = vadd.f32 %v816_v63, %v752_v56  ;;  %v818_v4 = vpop.f32.mrb[14].mxu0  ;;  %v858_v5 = vpop.f32.mrb[14].mxu1 }
 0x184   : > { %v819_v6 = vpop.f32.mrb[15].mxu0  ;;  %v3873_v7 = vpop.f32.mrb[15].mxu1 }
 0x189   : > { %v924_v8 = vpop.f32.mrb[16].mxu0  ;;  %v965_v11 = vpop.f32.mrb[16].mxu1 }
 0x18a   : > { %v971_v12 = vadd.f32 %v924_v8, %v861_v61  ;;  %v973_v13 = vadd.f32 %v965_v11, %v863_v62  ;;  %v926_v14 = vpop.f32.mrb[17].mxu0  ;;  %v3878_v15 = vpop.f32.mrb[17].mxu1 }
 0x18b   : > { %v972_v16 = vadd.f32 %v926_v14, %v862_v3  ;;  %v928_v17 = vpop.f32.mrb[18].mxu0  ;;  %v968_v18 = vpop.f32.mrb[18].mxu1 }
 0x18c   : > { %v929_v43 = vpop.f32.mrb[19].mxu0  ;;  %v3879_v42 = vpop.f32.mrb[19].mxu1 }
 0x191   : > { %v1034_v19 = vpop.f32.mrb[20].mxu0  ;;  %v1075_v32 = vpop.f32.mrb[20].mxu1 }
 0x192   : > { %v1081_v46 = vadd.f32 %v1034_v19, %v971_v12  ;;  %v1083_v20 = vadd.f32 %v1075_v32, %v973_v13  ;;  %v1036_v21 = vpop.f32.mrb[21].mxu0  ;;  %v3884_v22 = vpop.f32.mrb[21].mxu1 }
 0x193   : > { %v1082_v23 = vadd.f32 %v1036_v21, %v972_v16  ;;  %v1038_v24 = vpop.f32.mrb[22].mxu0  ;;  %v1078_v25 = vpop.f32.mrb[22].mxu1 }
 0x194   : > { %v1039_v26 = vpop.f32.mrb[23].mxu0  ;;  %v3885_v27 = vpop.f32.mrb[23].mxu1 }
 0x199   : > { %v1144_v28 = vpop.f32.mrb[24].mxu0  ;;  %v1185_v29 = vpop.f32.mrb[24].mxu1 }
 0x19a   : > { %v1191_v30 = vadd.f32 %v1144_v28, %v1081_v46  ;;  %v1193_v31 = vadd.f32 %v1185_v29, %v1083_v20  ;;  %v1146_v33 = vpop.f32.mrb[25].mxu0  ;;  %v3890_v34 = vpop.f32.mrb[25].mxu1 }
 0x19b   : > { %v1192_v35 = vadd.f32 %v1146_v33, %v1082_v23  ;;  %v1148_v36 = vpop.f32.mrb[26].mxu0  ;;  %v1188_v37 = vpop.f32.mrb[26].mxu1 }
 0x19c   : > { %v1149_v1 = vpop.f32.mrb[27].mxu0  ;;  %v3891_v38 = vpop.f32.mrb[27].mxu1 }
 0x1a1   : > { %v1254_v39 = vpop.f32.mrb[28].mxu0  ;;  %v1295_v0 = vpop.f32.mrb[28].mxu1 }
 0x1a2   : > { %v1301_v40 = vadd.f32 %v1254_v39, %v1191_v30  ;;  %v1303_v41 = vadd.f32 %v1295_v0, %v1193_v31  ;;  %v1256_v44 = vpop.f32.mrb[29].mxu0  ;;  %v3896_v45 = vpop.f32.mrb[29].mxu1 }
 0x1a3   : > { %v1302_v47 = vadd.f32 %v1256_v44, %v1192_v35  ;;  %v1258_v48 = vpop.f32.mrb[30].mxu0  ;;  %v1298_v49 = vpop.f32.mrb[30].mxu1 }
 0x1a4   : > { %v1259_v50 = vpop.f32.mrb[31].mxu0  ;;  %v3897_v51 = vpop.f32.mrb[31].mxu1 }
 0x1a9   : > { %v1364_v52 = vpop.f32.mrb[32].mxu0  ;;  %v1405_v53 = vpop.f32.mrb[32].mxu1 }
 0x1aa   : > { %v1411_v54 = vadd.f32 %v1364_v52, %v1301_v40  ;;  %v1413_v55 = vadd.f32 %v1405_v53, %v1303_v41  ;;  %v1366_v56 = vpop.f32.mrb[33].mxu0  ;;  %v3902_v10 = vpop.f32.mrb[33].mxu1 }
 0x1ab   : > { %v1412_v9 = vadd.f32 %v1366_v56, %v1302_v47  ;;  %v1368_v57 = vpop.f32.mrb[34].mxu0  ;;  %v1408_v58 = vpop.f32.mrb[34].mxu1 }
 0x1ac   : > { %v1369_v59 = vpop.f32.mrb[35].mxu0  ;;  %v3903_v60 = vpop.f32.mrb[35].mxu1 }
 0x1b1   : > { %v1472_v61 = vpop.f32.mrb[36].mxu0  ;;  %v1513_v62 = vpop.f32.mrb[36].mxu1 }
 0x1b2   : > { %v1519_v63 = vadd.f32 %v1472_v61, %v1411_v54  ;;  %v1521_v2 = vadd.f32 %v1513_v62, %v1413_v55  ;;  %v1474_v3 = vpop.f32.mrb[37].mxu0  ;;  %v3908_v4 = vpop.f32.mrb[37].mxu1 }
 0x1b3   : > { %v1520_v5 = vadd.f32 %v1474_v3, %v1412_v9  ;;  %v1476_v6 = vpop.f32.mrb[38].mxu0  ;;  %v1516_v7 = vpop.f32.mrb[38].mxu1 }
 0x1b4   : > { %v1477_v8 = vpop.f32.mrb[39].mxu0  ;;  %v3909_v11 = vpop.f32.mrb[39].mxu1 }
 0x1b9   : > { %v1593_v12 = vpop.f32.mrb[40].mxu0  ;;  %v1634_v13 = vpop.f32.mrb[40].mxu1 }
 0x1ba   : > { %v1640_v14 = vadd.f32 %v1593_v12, %v1519_v63  ;;  %v1642_v15 = vadd.f32 %v1634_v13, %v1521_v2  ;;  %v1595_v16 = vpop.f32.mrb[41].mxu0  ;;  %v3914_v17 = vpop.f32.mrb[41].mxu1 }
 0x1bb   : > { %v1641_v18 = vadd.f32 %v1595_v16, %v1520_v5  ;;  %v1597_v43 = vpop.f32.mrb[42].mxu0  ;;  %v1637_v42 = vpop.f32.mrb[42].mxu1 }
 0x1bc   : > { %v1598_v19 = vpop.f32.mrb[43].mxu0  ;;  %v3915_v32 = vpop.f32.mrb[43].mxu1 }
 0x1c1   : > { %v1702_v46 = vpop.f32.mrb[44].mxu0  ;;  %v1743_v20 = vpop.f32.mrb[44].mxu1 }
 0x1c2   : > { %v1749_v21 = vadd.f32 %v1702_v46, %v1640_v14  ;;  %v1751_v22 = vadd.f32 %v1743_v20, %v1642_v15  ;;  %v1704_v23 = vpop.f32.mrb[45].mxu0  ;;  %v3920_v24 = vpop.f32.mrb[45].mxu1 }
 0x1c3   : > { %v1750_v25 = vadd.f32 %v1704_v23, %v1641_v18  ;;  %v1706_v26 = vpop.f32.mrb[46].mxu0  ;;  %v1746_v27 = vpop.f32.mrb[46].mxu1 }
 0x1c4   : > { %v1707_v28 = vpop.f32.mrb[47].mxu0  ;;  %v3921_v29 = vpop.f32.mrb[47].mxu1 }
 0x1c9   : > { %v1811_v30 = vpop.f32.mrb[48].mxu0  ;;  %v1852_v31 = vpop.f32.mrb[48].mxu1 }
 0x1ca   : > { %v1858_v33 = vadd.f32 %v1811_v30, %v1749_v21  ;;  %v1860_v34 = vadd.f32 %v1852_v31, %v1751_v22  ;;  %v1813_v35 = vpop.f32.mrb[49].mxu0  ;;  %v3926_v36 = vpop.f32.mrb[49].mxu1 }
 0x1cb   : > { %v1859_v37 = vadd.f32 %v1813_v35, %v1750_v25  ;;  %v1815_v1 = vpop.f32.mrb[50].mxu0  ;;  %v1855_v38 = vpop.f32.mrb[50].mxu1 }
 0x1cc   : > { %v1816_v39 = vpop.f32.mrb[51].mxu0  ;;  %v3927_v0 = vpop.f32.mrb[51].mxu1 }
 0x1d1   : > { %v1920_v40 = vpop.f32.mrb[52].mxu0  ;;  %v1961_v41 = vpop.f32.mrb[52].mxu1 }
 0x1d2   : > { %v1967_v44 = vadd.f32 %v1920_v40, %v1858_v33  ;;  %v1969_v45 = vadd.f32 %v1961_v41, %v1860_v34  ;;  %v1922_v47 = vpop.f32.mrb[53].mxu0  ;;  %v3932_v48 = vpop.f32.mrb[53].mxu1 }
 0x1d3   : > { %v1968_v49 = vadd.f32 %v1922_v47, %v1859_v37  ;;  %v1924_v50 = vpop.f32.mrb[54].mxu0  ;;  %v1964_v51 = vpop.f32.mrb[54].mxu1 }
 0x1d4   : > { %v1925_v52 = vpop.f32.mrb[55].mxu0  ;;  %v3933_v53 = vpop.f32.mrb[55].mxu1 }
 0x1d9   : > { %v2029_v54 = vpop.f32.mrb[56].mxu0  ;;  %v2070_v55 = vpop.f32.mrb[56].mxu1 }
 0x1da   : > { %v2076_v56 = vadd.f32 %v2029_v54, %v1967_v44  ;;  %v2078_v10 = vadd.f32 %v2070_v55, %v1969_v45  ;;  %v2031_v9 = vpop.f32.mrb[57].mxu0  ;;  %v3938_v57 = vpop.f32.mrb[57].mxu1 }
 0x1db   : > { %v2077_v58 = vadd.f32 %v2031_v9, %v1968_v49  ;;  %v2033_v59 = vpop.f32.mrb[58].mxu0  ;;  %v2073_v60 = vpop.f32.mrb[58].mxu1 }
 0x1dc   : > { %v2034_v61 = vpop.f32.mrb[59].mxu0  ;;  %v3939_v62 = vpop.f32.mrb[59].mxu1 }
 0x1e1   : > { %v2138_v63 = vpop.f32.mrb[60].mxu0  ;;  %v2179_v2 = vpop.f32.mrb[60].mxu1 }
 0x1e2   : > { %v2185_v3 = vadd.f32 %v2138_v63, %v2076_v56  ;;  %v2187_v4 = vadd.f32 %v2179_v2, %v2078_v10  ;;  %v2140_v5 = vpop.f32.mrb[61].mxu0  ;;  %v3944_v6 = vpop.f32.mrb[61].mxu1 }
 0x1e3   : > { %v2186_v7 = vadd.f32 %v2140_v5, %v2077_v58  ;;  %v2142_v8 = vpop.f32.mrb[62].mxu0  ;;  %v2182_v11 = vpop.f32.mrb[62].mxu1 }
 0x1e4   : > { %v2143_v12 = vpop.f32.mrb[63].mxu0  ;;  %v3945_v13 = vpop.f32.mrb[63].mxu1 }
 0x1e9   : > { %v2247_v14 = vpop.f32.mrb[64].mxu0  ;;  %v2288_v15 = vpop.f32.mrb[64].mxu1 }
 0x1ea   : > { %v2294_v16 = vadd.f32 %v2247_v14, %v2185_v3  ;;  %v2296_v17 = vadd.f32 %v2288_v15, %v2187_v4  ;;  %v2249_v18 = vpop.f32.mrb[65].mxu0  ;;  %v3950_v43 = vpop.f32.mrb[65].mxu1 }
 0x1eb   : > { %v2295_v42 = vadd.f32 %v2249_v18, %v2186_v7  ;;  %v2251_v19 = vpop.f32.mrb[66].mxu0  ;;  %v2291_v32 = vpop.f32.mrb[66].mxu1 }
 0x1ec   : > { %v2252_v46 = vpop.f32.mrb[67].mxu0  ;;  %v3951_v20 = vpop.f32.mrb[67].mxu1 }
 0x1f1   : > { %v2356_v21 = vpop.f32.mrb[68].mxu0  ;;  %v2397_v22 = vpop.f32.mrb[68].mxu1 }
 0x1f2   : > { %v2403_v23 = vadd.f32 %v2356_v21, %v2294_v16  ;;  %v2405_v24 = vadd.f32 %v2397_v22, %v2296_v17  ;;  %v2358_v25 = vpop.f32.mrb[69].mxu0  ;;  %v3956_v26 = vpop.f32.mrb[69].mxu1 }
 0x1f3   : > { %v2404_v27 = vadd.f32 %v2358_v25, %v2295_v42  ;;  %v2360_v28 = vpop.f32.mrb[70].mxu0  ;;  %v2400_v29 = vpop.f32.mrb[70].mxu1 }
 0x1f4   : > { %v2361_v30 = vpop.f32.mrb[71].mxu0  ;;  %v3957_v31 = vpop.f32.mrb[71].mxu1 }
 0x1f9   : > { %v2464_v33 = vpop.f32.mrb[72].mxu0  ;;  %v2505_v34 = vpop.f32.mrb[72].mxu1 }
 0x1fa   : > { %v2511_v35 = vadd.f32 %v2464_v33, %v2403_v23  ;;  %v2513_v36 = vadd.f32 %v2505_v34, %v2405_v24  ;;  %v2466_v37 = vpop.f32.mrb[73].mxu0  ;;  %v3962_v1 = vpop.f32.mrb[73].mxu1 }
 0x1fb   : > { %v2512_v38 = vadd.f32 %v2466_v37, %v2404_v27  ;;  %v2468_v39 = vpop.f32.mrb[74].mxu0  ;;  %v2508_v0 = vpop.f32.mrb[74].mxu1 }
 0x1fc   : > { %v2469_v40 = vpop.f32.mrb[75].mxu0  ;;  %v3963_v41 = vpop.f32.mrb[75].mxu1 }
 0x201   : > { %v2585_v44 = vpop.f32.mrb[76].mxu0  ;;  %v2626_v45 = vpop.f32.mrb[76].mxu1 }
 0x202   : > { %v2632_v47 = vadd.f32 %v2585_v44, %v2511_v35  ;;  %v2634_v48 = vadd.f32 %v2626_v45, %v2513_v36  ;;  %v2587_v49 = vpop.f32.mrb[77].mxu0  ;;  %v3968_v50 = vpop.f32.mrb[77].mxu1 }
 0x203   : > { %v2633_v51 = vadd.f32 %v2587_v49, %v2512_v38  ;;  %v2589_v52 = vpop.f32.mrb[78].mxu0  ;;  %v2629_v53 = vpop.f32.mrb[78].mxu1 }
 0x204   : > { %v2590_v54 = vpop.f32.mrb[79].mxu0  ;;  %v3969_v55 = vpop.f32.mrb[79].mxu1 }
 0x209   : > { %v2694_v56 = vpop.f32.mrb[80].mxu0  ;;  %v2735_v10 = vpop.f32.mrb[80].mxu1 }
 0x20a   : > { %v2741_v9 = vadd.f32 %v2694_v56, %v2632_v47  ;;  %v2743_v57 = vadd.f32 %v2735_v10, %v2634_v48  ;;  %v2696_v58 = vpop.f32.mrb[81].mxu0  ;;  %v3974_v59 = vpop.f32.mrb[81].mxu1  ;;  %v3424_v47 = vlaneseq }
 0x20b   : > { %v2742_v60 = vadd.f32 %v2696_v58, %v2633_v51  ;;  %v2698_v61 = vpop.f32.mrb[82].mxu0  ;;  %v2738_v62 = vpop.f32.mrb[82].mxu1  ;;  %v3422_v59 = vld [vmem:[%s4880_s5] sm:$0x7] }
 0x20c   : > { %v2699_v63 = vpop.f32.mrb[83].mxu0  ;;  %v3975_v2 = vpop.f32.mrb[83].mxu1  ;;  %v3425_v54 = vshrl.u32 %v3424_v47, 7 }
 0x20d   : > { %v3402_v61 = vpop.permute.xlu0 %3401 }
 0x20e   : > { %v3426_v58 = vsub.s32 0, %v3425_v54  ;;  %v3434_v2 = vsub.s32 2, %v3425_v54 }
 0x211   : > { %v2803_v3 = vpop.f32.mrb[84].mxu0  ;;  %v2844_v4 = vpop.f32.mrb[84].mxu1 }
 0x212   : > { %v2850_v5 = vadd.f32 %v2803_v3, %v2741_v9  ;;  %v2852_v6 = vadd.f32 %v2844_v4, %v2743_v57  ;;  %v2805_v7 = vpop.f32.mrb[85].mxu0  ;;  %v3980_v8 = vpop.f32.mrb[85].mxu1 }
 0x213   : > { %v2851_v11 = vadd.f32 %v2805_v7, %v2742_v60  ;;  %v2807_v12 = vpop.f32.mrb[86].mxu0  ;;  %v2847_v13 = vpop.f32.mrb[86].mxu1  ;;  %v3430_v60 = vsub.s32 1, %v3425_v54  ;;  %v3427_v7 = vrot.slane %v3422_v59, %v3426_v58 }
 0x214   : > { %v2808_v14 = vpop.f32.mrb[87].mxu0  ;;  %v3981_v15 = vpop.f32.mrb[87].mxu1 }
 0x215   : > { %v3431_v13 = vrot.slane %v3422_v59, %v3430_v60 }
 0x219   : > { %v2912_v16 = vpop.f32.mrb[88].mxu0  ;;  %v2953_v17 = vpop.f32.mrb[88].mxu1 }
 0x21a   : > { %v2959_v18 = vadd.f32 %v2912_v16, %v2850_v5  ;;  %v2961_v43 = vadd.f32 %v2953_v17, %v2852_v6  ;;  %v2914_v42 = vpop.f32.mrb[89].mxu0  ;;  %v3986_v19 = vpop.f32.mrb[89].mxu1 }
 0x21b   : > { %v2960_v32 = vadd.f32 %v2914_v42, %v2851_v11  ;;  %v2916_v46 = vpop.f32.mrb[90].mxu0  ;;  %v2956_v20 = vpop.f32.mrb[90].mxu1 }
 0x21c   : > { %v2917_v21 = vpop.f32.mrb[91].mxu0  ;;  %v3987_v22 = vpop.f32.mrb[91].mxu1 }
 0x221   : > { %v3021_v23 = vpop.f32.mrb[92].mxu0  ;;  %v3062_v24 = vpop.f32.mrb[92].mxu1 }
 0x222   : > { %v3068_v25 = vadd.f32 %v3021_v23, %v2959_v18  ;;  %v3070_v26 = vadd.f32 %v3062_v24, %v2961_v43  ;;  %v3023_v27 = vpop.f32.mrb[93].mxu0  ;;  %v3992_v28 = vpop.f32.mrb[93].mxu1  ;;  %v3435_v43 = vrot.slane %v3422_v59, %v3434_v2 }
 0x223   : > { %v3069_v29 = vadd.f32 %v3023_v27, %v2960_v32  ;;  %v3025_v30 = vpop.f32.mrb[94].mxu0  ;;  %v3065_v31 = vpop.f32.mrb[94].mxu1 }
 0x224   : > { %v3026_v33 = vpop.f32.mrb[95].mxu0  ;;  %v3993_v34 = vpop.f32.mrb[95].mxu1 }
 0x229   : > { %v3130_v35 = vpop.f32.mrb[96].mxu0  ;;  %v3171_v36 = vpop.f32.mrb[96].mxu1 }
 0x22a   : > { %v3177_v37 = vadd.f32 %v3130_v35, %v3068_v25  ;;  %v3179_v1 = vadd.f32 %v3171_v36, %v3070_v26  ;;  %v3132_v38 = vpop.f32.mrb[97].mxu0  ;;  %v3998_v39 = vpop.f32.mrb[97].mxu1 }
 0x22b   : > { %v3178_v0 = vadd.f32 %v3132_v38, %v3069_v29  ;;  %v3134_v40 = vpop.f32.mrb[98].mxu0  ;;  %v3174_v41 = vpop.f32.mrb[98].mxu1 }
 0x22c   : > { %v3135_v44 = vpop.f32.mrb[99].mxu0  ;;  %v3999_v45 = vpop.f32.mrb[99].mxu1 }
 0x231   : > { %v3239_v48 = vpop.f32.mrb[100].mxu0  ;;  %v3280_v49 = vpop.f32.mrb[100].mxu1 }
 0x232   : > { %v3286_v50 = vadd.f32 %v3239_v48, %v3177_v37  ;;  %v3288_v51 = vadd.f32 %v3280_v49, %v3179_v1  ;;  %v3241_v52 = vpop.f32.mrb[101].mxu0  ;;  %v4004_v53 = vpop.f32.mrb[101].mxu1 }
 0x233   : > { %v3287_v55 = vadd.f32 %v3241_v52, %v3178_v0  ;;  %v3243_v56 = vpop.f32.mrb[102].mxu0  ;;  %v3283_v10 = vpop.f32.mrb[102].mxu1 }
 0x234   : > { %v3244_v9 = vpop.f32.mrb[103].mxu0  ;;  %v4005_v57 = vpop.f32.mrb[103].mxu1 }
 0x239   : > { %v3348_v62 = vpop.f32.mrb[104].mxu0  ;;  %v3389_v63 = vpop.f32.mrb[104].mxu1 }
 0x23a   : > { %v3395_v3 = vadd.f32 %v3348_v62, %v3286_v50  ;;  %v3397_v4 = vadd.f32 %v3389_v63, %v3288_v51  ;;  %v3350_v5 = vpop.f32.mrb[105].mxu0  ;;  %v4010_v6 = vpop.f32.mrb[105].mxu1 }
 0x23b   : > { %v3396_v8 = vadd.f32 %v3350_v5, %v3287_v55  ;;  %v3352_v11 = vpop.f32.mrb[106].mxu0  ;;  %v3392_v12 = vpop.f32.mrb[106].mxu1 }
 0x23c   : > { %v3404_v14 = vadd.f32 %v3402_v61, %v3395_v3  ;;  %v3406_v15 = vadd.f32 %v3402_v61, %v3397_v4  ;;  %v3353_v16 = vpop.f32.mrb[107].mxu0  ;;  %v4011_v17 = vpop.f32.mrb[107].mxu1 }
 0x23d   : > { %v3405_v18 = vadd.f32 %v3402_v61, %v3396_v8 }
 0x23e   : > { %v3795_v42 = vpack.c.bf16 %v3406_v15, %v3406_v15  ;;  %v3439_v19 = vmul.f32 %v3427_v7, %v3404_v14  ;;  %v3441_v20 = vmul.f32 %v3435_v43, %v3406_v15 }
 0x23f   : > { %v3794_v32 = vpack.c.bf16 %v3405_v18, %v3404_v14  ;;  %v3440_v46 = vmul.f32 %v3431_v13, %v3405_v18 }
 0x240   : > { %3421 = vst [vmem:[%s409_s17 + $0x8] sm:$0xf] %v3795_v42 }
 0x241   : > { %v3442_v21 = vadd.f32 %v3440_v46, %v3439_v19  ;;  %3420 = vst [vmem:[%s409_s17] sm:$0xff] %v3794_v32 }
 0x243   : > { %v3443_v22 = vadd.f32 %v3442_v21, %v3441_v20 }
 0x245   : > { %3444 = vadd.xlane.f32.xlu1 %v3443_v22 }
 0x2d2   : > { %v3445_v23 = vpop.xlane.xlu1 %3444 }
 0x2d3   : > { %v3446_v24 = vmul.f32 0.00390625, %v3445_v23 }
 0x2d5   : > { %v3447_v25 = vsub.f32 %v3404_v14, %v3446_v24  ;;  %v3448_v26 = vsub.f32 %v3405_v18, %v3446_v24  ;;  %v3449_v27 = vsub.f32 %v3406_v15, %v3446_v24 }
 0x2d7   : > { %v3450_v28 = vmul.f32 %v3447_v25, %v3427_v7  ;;  %v3451_v29 = vmul.f32 %v3448_v26, %v3431_v13  ;;  %v3452_v30 = vmul.f32 %v3449_v27, %v3435_v43 }
 0x2d9   : > { %v3453_v31 = vmul.f32 %v3450_v28, %v3450_v28  ;;  %v3454_v33 = vmul.f32 %v3451_v29, %v3451_v29  ;;  %v3455_v34 = vmul.f32 %v3452_v30, %v3452_v30 }
 0x2db   : > { %v3456_v35 = vadd.f32 %v3454_v33, %v3453_v31 }
 0x2dd   : > { %v3457_v36 = vadd.f32 %v3456_v35, %v3455_v34 }
 0x2df   : > { %3458 = vadd.xlane.f32.xlu0 %v3457_v36 }
 0x36c   : > { %v3459_v37 = vpop.xlane.xlu0 %3458 }
 0x36d   : > { %v3461_v1 = vsel %vm3460_vm11, %v3446_v24, %v3459_v37 }
 0x36e   : > { %3463 = vst.msk [vmem:[%s417_s15] sm:$0xff] %vm3462_vm12, %v3461_v1 }
 0x36f PF: > { %s18_s28 = sadd.s32 1, %s4120_s28   ;;  %s4883_s24 = smov %s4112_s26 }
 0x370   : > { %p15_p10 = scmp.ge.s32.totalorder %s18_s28, 34   ;;  %s4884_s25 = smov %s4116_s27 }
 0x371   : > { %s4885_s26 = smov %s4888_s29  ;;  %s4886_s27 = smov %s4892_s30 }
 0x372   :  { %17 = sbr.rel (!%p15_p10) target bundleno = 3 (0x3), region = 118 }

</bundles_post_ra>
